<compile_context>
chip_gen: v5e
topology: v5e:2x2
jax: 0.10.0
libtpu: 0.0.40
codegen_flags: <defaults>
</compile_context>

<pallas_src>
import jax
import jax.numpy as jnp
from jax import lax
from jax.experimental import pallas as pl
from jax.experimental.pallas import tpu as pltpu  # noqa: F401  (TPU backend; kept for completeness)

# ---------------- static problem / model sizes ----------------
B, T = 2, 4          # batch, (padded) sequence length
H = W = 16           # per-chunk spatial size, 1 input channel
C1, C2 = 32, 64      # conv channels
FEAT = 64            # lstm_input_size  (AudioClassifier out_features)
HID = 128            # LSTM hidden size
NCLS = 5             # num_classes
NCLS_PAD = 128       # lane-dense padded logits width
LANES = 128

# derived CNN spatial sizes (stride-2 valid convs, maxpool k=2 s=2 p=1)
OH1 = (H - 3) // 2 + 1            # 7
OW1 = (W - 3) // 2 + 1            # 7
PH = OH1 // 2 + 1                 # 4
PW = OW1 // 2 + 1                 # 4
OH2 = (PH - 3) // 2 + 1           # 1
OW2 = (PW - 3) // 2 + 1           # 1
NFR = B * T                       # frames processed per call

# conv1 positions the pooling actually reads (pooled[0:3,0:3] <- h1 rows/cols 0..4)
NP = 5                            # 5x5 positions per frame
RPF = 32                          # rows per frame in pats (25 used, padded to vreg multiple)
NPAT = NFR * RPF                  # 256 patch rows
MROWS = 8                         # mask rows appended (first B used)
PATS_ROWS = NPAT + MROWS          # 264

# slab_a row layout (all matmul operands start on 8-aligned rows)
ROW_W1 = 0                        # rows 0:128 reserved, only 0:9 nonzero (full-128 contraction)
ROW_B1 = 128
ROW_B2 = 129
ROW_BL = 130
ROW_BO = 131
ROW_W2 = 136                      # 9 tap blocks of (32,64): rows 136 + 32*k
ROW_WL = ROW_W2 + 9 * C1          # 424
ROW_WO = ROW_WL + C2              # 488
ROWS_A = ROW_WO + HID             # 616

# slab_b row layout (512 lanes)
ROW_WIH = 0                       # (64, 512)
ROW_WHH = FEAT                    # (128, 512)
ROW_BLSTM = FEAT + HID            # 192
ROWS_B = 200


# ---------------- single fused kernel: CNN (all frames) + LSTM + head ----------------
def lrcn_kernel(pats_ref, pa_ref, pb_ref, o_ref):
    # ---- conv1 + bn1(eval, folded) + relu: one matmul for all frames, 5x5 positions only ----
    x = pats_ref[0:NPAT, :]                                   # (256, 128); taps in lanes 0:9
    h1 = jnp.dot(x, pa_ref[ROW_W1:ROW_W1 + LANES, 0:C1],
                 preferred_element_type=jnp.float32)
    h1 = jnp.maximum(h1 + pa_ref[ROW_B1:ROW_B1 + 1, 0:C1], 0.0)
    # TODO(synk): nn.Dropout(p=0.1) is identity at inference; no RNG applied.
    h1 = h1.reshape(NFR, RPF, C1)                             # free: RPF mult of 8, lanes unchanged

    # ---- MaxPool2d(k=2, s=2, p=1), only the taps conv2 reads; no concatenates ----
    # pooled row/col 0 = h1 row/col 0; j>0 = max(2j-1, 2j).  Valid ONLY because this
    # follows ReLU (h1 >= 0) and PyTorch pads maxpool with -inf, so padding never wins.
    pr0 = h1[:, 0:NP, :]                                      # (NFR, 5, C1)
    pr1 = jnp.maximum(h1[:, NP:2 * NP, :], h1[:, 2 * NP:3 * NP, :])
    pr2 = jnp.maximum(h1[:, 3 * NP:4 * NP, :], h1[:, 4 * NP:5 * NP, :])

    def col_taps(pr):                                         # (NFR,5,C1) -> three (NFR,C1) taps
        return (pr[:, 0, :],
                jnp.maximum(pr[:, 1, :], pr[:, 2, :]),
                jnp.maximum(pr[:, 3, :], pr[:, 4, :]))

    taps = col_taps(pr0) + col_taps(pr1) + col_taps(pr2)      # tap k = kh*3 + kw

    # ---- conv2 + bn2(eval, folded) + relu: nine accumulated (NFR,32)@(32,64) pushes ----
    acc2 = jnp.dot(taps[0], pa_ref[ROW_W2:ROW_W2 + C1, 0:C2],
                   preferred_element_type=jnp.float32) + pa_ref[ROW_B2:ROW_B2 + 1, 0:C2]
    for k in range(1, 9):
        acc2 = acc2 + jnp.dot(taps[k], pa_ref[ROW_W2 + C1 * k:ROW_W2 + C1 * (k + 1), 0:C2],
                              preferred_element_type=jnp.float32)
    h2 = jnp.maximum(acc2, 0.0)                               # (NFR, 64); AdaptiveAvgPool2d(1) on 1x1 = id
    feats = jnp.dot(h2, pa_ref[ROW_WL:ROW_WL + C2, 0:FEAT],
                    preferred_element_type=jnp.float32) + pa_ref[ROW_BL:ROW_BL + 1, 0:FEAT]

    # ---- LSTM: input projection hoisted out of the recurrence; gates packed [i, f, o | g] ----
    gx = jnp.dot(feats, pb_ref[ROW_WIH:ROW_WIH + FEAT, :],
                 preferred_element_type=jnp.float32) + pb_ref[ROW_BLSTM:ROW_BLSTM + 1, :]
    gx = gx.reshape(B, T, 4 * HID)                            # (B, T, 512)
    whh = pb_ref[ROW_WHH:ROW_WHH + HID, :]                    # (128, 512)
    mask_s = pats_ref[NPAT:NPAT + B, 0:T]                     # (B, T); already includes 1/length

    h = jnp.zeros((B, HID), jnp.float32)
    c = jnp.zeros((B, HID), jnp.float32)
    acc = jnp.zeros((B, HID), jnp.float32)
    for t in range(T):                                        # static unroll (T=4)
        gates = gx[:, t, :] + jnp.dot(h, whh, preferred_element_type=jnp.float32)
        s = jax.nn.sigmoid(gates[:, 0:3 * HID])               # i | f | o in one EUP pass
        g = jnp.tanh(gates[:, 3 * HID:4 * HID])
        c = s[:, HID:2 * HID] * c + s[:, 0:HID] * g
        h = s[:, 2 * HID:3 * HID] * jnp.tanh(c)
        # pack_padded_sequence semantics: LSTM is causal, so running padded steps and
        # masking their outputs reproduces the packed result exactly.
        acc = acc + mask_s[:, t:t + 1] * h

    # TODO(synk): nn.Dropout(p=0.4, inplace=True) is identity at inference.
    # Masked mean commutes with the affine final Linear; wo/bo padded to 128 output lanes
    # so the kernel's only store is a lane-dense (B, 128) slab (host slices to NCLS).
    o_ref[...] = jnp.dot(acc, pa_ref[ROW_WO:ROW_WO + HID, :],
                         preferred_element_type=jnp.float32) + pa_ref[ROW_BO:ROW_BO + 1, :]


# ---------------- host wrapper: one jit around glue + pallas_call ----------------
@jax.jit
def lrcn_forward(data, lengths, slab_a, slab_b):
    """data: (B, T, 1, H, W) float32; lengths: (B,) int32 (>= 1). Returns (B, NCLS)."""
    frames = data.reshape(NFR, H, W)
    # im2col only for the 5x5 conv1 output positions the pooling reads; tap k = kh*3+kw
    pats = jnp.stack([frames[:, kh:kh + 2 * NP - 1:2, kw:kw + 2 * NP - 1:2]
                      for kh in range(3) for kw in range(3)], axis=-1)     # (NFR, 5, 5, 9)
    pats = pats.reshape(NFR, NP * NP, 9)
    pats = jnp.pad(pats, ((0, 0), (0, RPF - NP * NP), (0, LANES - 9)))     # pad rows->32, lanes->128
    pats = pats.reshape(NPAT, LANES)

    # per-step mask already divided by length (masked mean); lengths must be >= 1
    # (pack_padded_sequence guarantees this; the maximum() only guards against inf/NaN).
    lengths_f = jnp.maximum(lengths, 1).astype(jnp.float32)
    mask_s = (jnp.arange(T) < lengths[:, None]).astype(jnp.float32) / lengths_f[:, None]
    mask_rows = jnp.zeros((MROWS, LANES), jnp.float32).at[:B, :T].set(mask_s)
    pats_ext = jnp.concatenate([pats, mask_rows], axis=0)                  # (264, 128)

    out = pl.pallas_call(
        lrcn_kernel,
        out_shape=jax.ShapeDtypeStruct((B, NCLS_PAD), jnp.float32),
    )(pats_ext, slab_a, slab_b)
    return out[:, :NCLS]


# ---------------- deterministic parameter init (PyTorch layouts, then packed) ----------------
def init_params(key):
    ks = jax.random.split(key, 15)

    def nrm(k, shape, scale=0.1):
        return scale * jax.random.normal(k, shape, dtype=jnp.float32)

    # AudioClassifier
    w1 = nrm(ks[0], (C1, 1, 3, 3)); b1 = nrm(ks[1], (C1,))
    g1 = 1.0 + 0.1 * jax.random.normal(ks[2], (C1,), jnp.float32)
    be1 = nrm(ks[3], (C1,)); m1 = nrm(ks[4], (C1,))
    v1 = 1.0 + 0.5 * jax.random.uniform(ks[5], (C1,), dtype=jnp.float32)
    w2 = nrm(ks[6], (C2, C1, 3, 3)); b2 = nrm(ks[7], (C2,))
    g2 = 1.0 + 0.1 * jax.random.normal(ks[8], (C2,), jnp.float32)
    be2 = nrm(ks[9], (C2,)); m2 = nrm(ks[10], (C2,))
    v2 = 1.0 + 0.5 * jax.random.uniform(ks[11], (C2,), dtype=jnp.float32)
    wlin = nrm(ks[12], (FEAT, C2)); blin = nrm(ks[13], (FEAT,))
    # LSTM(64 -> 128) and final Linear(128 -> 5)
    k2s = jax.random.split(ks[14], 6)
    wih = nrm(k2s[0], (4 * HID, FEAT)); whh = nrm(k2s[1], (4 * HID, HID))
    bih = nrm(k2s[2], (4 * HID,)); bhh = nrm(k2s[3], (4 * HID,))
    wo = nrm(k2s[4], (NCLS, HID)); bo = nrm(k2s[5], (NCLS,))

    eps = 1e-5
    k1f = g1 / jnp.sqrt(v1 + eps)   # fold eval-mode BN into conv weights/bias
    k2f = g2 / jnp.sqrt(v2 + eps)
    w1e = w1.reshape(C1, 9).T * k1f[None, :]                               # (9, 32)
    b1e = (b1 - m1) * k1f + be1                                            # (32,)
    w2e = jnp.transpose(w2, (2, 3, 1, 0)).reshape(9 * C1, C2) * k2f[None, :]  # (288, 64), rows (kh,kw,cin)
    b2e = (b2 - m2) * k2f + be2                                            # (64,)

    # LSTM gate reorder: PyTorch [i, f, g, o] -> packed [i, f, o, g]
    perm = jnp.concatenate([jnp.arange(0, HID), jnp.arange(HID, 2 * HID),
                            jnp.arange(3 * HID, 4 * HID), jnp.arange(2 * HID, 3 * HID)])
    wih_t = wih.T[:, perm]                                                 # (64, 512)
    whh_t = whh.T[:, perm]                                                 # (128, 512)
    b_lstm = (bih + bhh)[perm]                                             # (512,)

    # ---- slab A: all 128-lane-or-narrower params at static 8-aligned row offsets ----
    slab_a = jnp.zeros((ROWS_A, LANES), jnp.float32)
    slab_a = slab_a.at[ROW_W1:ROW_W1 + 9, 0:C1].set(w1e)      # rows 9:128 stay zero
    slab_a = slab_a.at[ROW_B1, 0:C1].set(b1e)
    slab_a = slab_a.at[ROW_B2, 0:C2].set(b2e)
    slab_a = slab_a.at[ROW_BL, 0:FEAT].set(blin)
    slab_a = slab_a.at[ROW_BO, 0:NCLS].set(bo)
    slab_a = slab_a.at[ROW_W2:ROW_W2 + 9 * C1, 0:C2].set(w2e)
    slab_a = slab_a.at[ROW_WL:ROW_WL + C2, 0:FEAT].set(wlin.T)
    slab_a = slab_a.at[ROW_WO:ROW_WO + HID, 0:NCLS].set(wo.T)

    # ---- slab B: LSTM params (512 lanes) ----
    slab_b = jnp.zeros((ROWS_B, 4 * HID), jnp.float32)
    slab_b = slab_b.at[ROW_WIH:ROW_WIH + FEAT, :].set(wih_t)
    slab_b = slab_b.at[ROW_WHH:ROW_WHH + HID, :].set(whh_t)
    slab_b = slab_b.at[ROW_BLSTM, :].set(b_lstm)

    return {
        "slab_a": slab_a,
        "slab_b": slab_b,
        "_raw": dict(w1=w1, b1=b1, g1=g1, be1=be1, m1=m1, v1=v1,
                     w2=w2, b2=b2, g2=g2, be2=be2, m2=m2, v2=v2,
                     wlin=wlin, blin=blin, wih=wih, whh=whh, bih=bih, bhh=bhh,
                     wo=wo, bo=bo),
    }


# ---------------- pure-JAX reference (faithful to the PyTorch forward) ----------------
def torch_reference(data, lengths, raw):
    eps = 1e-5
    x = data.reshape(B * T, 1, H, W)
    y = lax.conv_general_dilated(x, raw["w1"], (2, 2), "VALID",
                                 dimension_numbers=("NCHW", "OIHW", "NCHW"))
    y = y + raw["b1"][None, :, None, None]
    y = (y - raw["m1"][None, :, None, None]) / jnp.sqrt(raw["v1"] + eps)[None, :, None, None]
    y = y * raw["g1"][None, :, None, None] + raw["be1"][None, :, None, None]
    y = jnp.maximum(y, 0.0)
    y = lax.reduce_window(y, -jnp.inf, lax.max, (1, 1, 2, 2), (1, 1, 2, 2),
                          [(0, 0), (0, 0), (1, 1), (1, 1)])
    y = lax.conv_general_dilated(y, raw["w2"], (2, 2), "VALID",
                                 dimension_numbers=("NCHW", "OIHW", "NCHW"))
    y = y + raw["b2"][None, :, None, None]
    y = (y - raw["m2"][None, :, None, None]) / jnp.sqrt(raw["v2"] + eps)[None, :, None, None]
    y = y * raw["g2"][None, :, None, None] + raw["be2"][None, :, None, None]
    y = jnp.maximum(y, 0.0)
    y = jnp.mean(y, axis=(2, 3))
    feats = (y @ raw["wlin"].T + raw["blin"]).reshape(B, T, FEAT)
    h = jnp.zeros((B, HID)); c = jnp.zeros((B, HID)); hs = []
    for t in range(T):
        gates = feats[:, t, :] @ raw["wih"].T + h @ raw["whh"].T + raw["bih"] + raw["bhh"]
        i = jax.nn.sigmoid(gates[:, :HID]); f = jax.nn.sigmoid(gates[:, HID:2 * HID])
        g = jnp.tanh(gates[:, 2 * HID:3 * HID]); o = jax.nn.sigmoid(gates[:, 3 * HID:])
        c = f * c + i * g
        h = o * jnp.tanh(c)
        hs.append(h)
    logits = jnp.stack(hs, axis=1) @ raw["wo"].T + raw["bo"]   # (B, T, NCLS)
    return jnp.stack([jnp.mean(logits[i, :int(L)], axis=0)
                      for i, L in enumerate(lengths.tolist())])  # test-only (tolist breaks jit)


if __name__ == "__main__":
    assert OH2 == 1 and OW2 == 1, "kernel hardcodes 1x1 conv2 output (16x16 input)"
    key = jax.random.PRNGKey(0)
    kp, kd = jax.random.split(key)
    params = init_params(kp)
    data = jax.random.normal(kd, (B, T, 1, H, W), dtype=jnp.float32)
    lengths = jnp.array([4, 3], dtype=jnp.int32)   # sorted descending (pack_padded_sequence)

    out = jax.block_until_ready(
        lrcn_forward(data, lengths, params["slab_a"], params["slab_b"]))
    assert out.shape == (B, NCLS)

    ref = torch_reference(data, lengths, params["_raw"])
    if not jnp.allclose(out, ref, atol=5e-4, rtol=5e-3):
        raise AssertionError(
            f"mismatch vs reference, max abs err {float(jnp.max(jnp.abs(out - ref)))}")
    print("KERNEL_OK")
</pallas_src>

<mosaic_0001>
module attributes {stable_mosaic.version = 11 : i64} {
  func.func @lrcn_kernel(%arg0: memref<264x128xf32, #tpu.memory_space<vmem>>, %arg1: memref<616x128xf32, #tpu.memory_space<vmem>>, %arg2: memref<200x512xf32, #tpu.memory_space<vmem>>, %arg3: memref<2x128xf32, #tpu.memory_space<vmem>>) attributes {dimension_semantics = [], scalar_prefetch = 0 : i64, scratch_operands = 0 : i64, tpu.core_type = #tpu.core_type<tc>} {
    %c0 = arith.constant 0 : index
    %c0_0 = arith.constant 0 : index
    %0 = vector.load %arg0[%c0, %c0_0] : memref<264x128xf32, #tpu.memory_space<vmem>>, vector<256x128xf32>
    %c0_1 = arith.constant 0 : index
    %c0_2 = arith.constant 0 : index
    %1 = vector.load %arg1[%c0_1, %c0_2] : memref<616x128xf32, #tpu.memory_space<vmem>>, vector<128x32xf32>
    %cst = arith.constant dense<0.000000e+00> : vector<256x32xf32>
    %2 = tpu.matmul %0, %1, %cst {dimension_numbers = #tpu.dot_dimension_numbers<[1], [0], [0], [1], [0, 0, 1, 1], [], []>} : vector<256x128xf32>, vector<128x32xf32>, vector<256x32xf32> -> vector<256x32xf32>
    %c128 = arith.constant 128 : index
    %c0_3 = arith.constant 0 : index
    %3 = vector.load %arg1[%c128, %c0_3] : memref<616x128xf32, #tpu.memory_space<vmem>>, vector<1x32xf32>
    %4 = vector.broadcast %3 : vector<1x32xf32> to vector<256x32xf32>
    %5 = arith.addf %2, %4 : vector<256x32xf32>
    %cst_4 = arith.constant 0.000000e+00 : f32
    %6 = vector.broadcast %cst_4 : f32 to vector<256x32xf32>
    %7 = arith.maximumf %5, %6 : vector<256x32xf32>
    %8 = vector.shape_cast %7 : vector<256x32xf32> to vector<8x32x32xf32>
    %9 = vector.extract_strided_slice %8 {offsets = [0, 0, 0], sizes = [8, 5, 32], strides = [1, 1, 1]} : vector<8x32x32xf32> to vector<8x5x32xf32>
    %10 = vector.extract_strided_slice %8 {offsets = [0, 5, 0], sizes = [8, 5, 32], strides = [1, 1, 1]} : vector<8x32x32xf32> to vector<8x5x32xf32>
    %11 = vector.extract_strided_slice %8 {offsets = [0, 10, 0], sizes = [8, 5, 32], strides = [1, 1, 1]} : vector<8x32x32xf32> to vector<8x5x32xf32>
    %12 = arith.maximumf %10, %11 : vector<8x5x32xf32>
    %13 = vector.extract_strided_slice %8 {offsets = [0, 15, 0], sizes = [8, 5, 32], strides = [1, 1, 1]} : vector<8x32x32xf32> to vector<8x5x32xf32>
    %14 = vector.extract_strided_slice %8 {offsets = [0, 20, 0], sizes = [8, 5, 32], strides = [1, 1, 1]} : vector<8x32x32xf32> to vector<8x5x32xf32>
    %15 = arith.maximumf %13, %14 : vector<8x5x32xf32>
    %16 = vector.extract_strided_slice %9 {offsets = [0, 0, 0], sizes = [8, 1, 32], strides = [1, 1, 1]} : vector<8x5x32xf32> to vector<8x1x32xf32>
    %17 = vector.shape_cast %16 : vector<8x1x32xf32> to vector<8x32xf32>
    %18 = vector.extract_strided_slice %9 {offsets = [0, 1, 0], sizes = [8, 1, 32], strides = [1, 1, 1]} : vector<8x5x32xf32> to vector<8x1x32xf32>
    %19 = vector.shape_cast %18 : vector<8x1x32xf32> to vector<8x32xf32>
    %20 = vector.extract_strided_slice %9 {offsets = [0, 2, 0], sizes = [8, 1, 32], strides = [1, 1, 1]} : vector<8x5x32xf32> to vector<8x1x32xf32>
    %21 = vector.shape_cast %20 : vector<8x1x32xf32> to vector<8x32xf32>
    %22 = arith.maximumf %19, %21 : vector<8x32xf32>
    %23 = vector.extract_strided_slice %9 {offsets = [0, 3, 0], sizes = [8, 1, 32], strides = [1, 1, 1]} : vector<8x5x32xf32> to vector<8x1x32xf32>
    %24 = vector.shape_cast %23 : vector<8x1x32xf32> to vector<8x32xf32>
    %25 = vector.extract_strided_slice %9 {offsets = [0, 4, 0], sizes = [8, 1, 32], strides = [1, 1, 1]} : vector<8x5x32xf32> to vector<8x1x32xf32>
    %26 = vector.shape_cast %25 : vector<8x1x32xf32> to vector<8x32xf32>
    %27 = arith.maximumf %24, %26 : vector<8x32xf32>
    %28 = vector.extract_strided_slice %12 {offsets = [0, 0, 0], sizes = [8, 1, 32], strides = [1, 1, 1]} : vector<8x5x32xf32> to vector<8x1x32xf32>
    %29 = vector.shape_cast %28 : vector<8x1x32xf32> to vector<8x32xf32>
    %30 = vector.extract_strided_slice %12 {offsets = [0, 1, 0], sizes = [8, 1, 32], strides = [1, 1, 1]} : vector<8x5x32xf32> to vector<8x1x32xf32>
    %31 = vector.shape_cast %30 : vector<8x1x32xf32> to vector<8x32xf32>
    %32 = vector.extract_strided_slice %12 {offsets = [0, 2, 0], sizes = [8, 1, 32], strides = [1, 1, 1]} : vector<8x5x32xf32> to vector<8x1x32xf32>
    %33 = vector.shape_cast %32 : vector<8x1x32xf32> to vector<8x32xf32>
    %34 = arith.maximumf %31, %33 : vector<8x32xf32>
    %35 = vector.extract_strided_slice %12 {offsets = [0, 3, 0], sizes = [8, 1, 32], strides = [1, 1, 1]} : vector<8x5x32xf32> to vector<8x1x32xf32>
    %36 = vector.shape_cast %35 : vector<8x1x32xf32> to vector<8x32xf32>
    %37 = vector.extract_strided_slice %12 {offsets = [0, 4, 0], sizes = [8, 1, 32], strides = [1, 1, 1]} : vector<8x5x32xf32> to vector<8x1x32xf32>
    %38 = vector.shape_cast %37 : vector<8x1x32xf32> to vector<8x32xf32>
    %39 = arith.maximumf %36, %38 : vector<8x32xf32>
    %40 = vector.extract_strided_slice %15 {offsets = [0, 0, 0], sizes = [8, 1, 32], strides = [1, 1, 1]} : vector<8x5x32xf32> to vector<8x1x32xf32>
    %41 = vector.shape_cast %40 : vector<8x1x32xf32> to vector<8x32xf32>
    %42 = vector.extract_strided_slice %15 {offsets = [0, 1, 0], sizes = [8, 1, 32], strides = [1, 1, 1]} : vector<8x5x32xf32> to vector<8x1x32xf32>
    %43 = vector.shape_cast %42 : vector<8x1x32xf32> to vector<8x32xf32>
    %44 = vector.extract_strided_slice %15 {offsets = [0, 2, 0], sizes = [8, 1, 32], strides = [1, 1, 1]} : vector<8x5x32xf32> to vector<8x1x32xf32>
    %45 = vector.shape_cast %44 : vector<8x1x32xf32> to vector<8x32xf32>
    %46 = arith.maximumf %43, %45 : vector<8x32xf32>
    %47 = vector.extract_strided_slice %15 {offsets = [0, 3, 0], sizes = [8, 1, 32], strides = [1, 1, 1]} : vector<8x5x32xf32> to vector<8x1x32xf32>
    %48 = vector.shape_cast %47 : vector<8x1x32xf32> to vector<8x32xf32>
    %49 = vector.extract_strided_slice %15 {offsets = [0, 4, 0], sizes = [8, 1, 32], strides = [1, 1, 1]} : vector<8x5x32xf32> to vector<8x1x32xf32>
    %50 = vector.shape_cast %49 : vector<8x1x32xf32> to vector<8x32xf32>
    %51 = arith.maximumf %48, %50 : vector<8x32xf32>
    %c136 = arith.constant 136 : index
    %c0_5 = arith.constant 0 : index
    %52 = vector.load %arg1[%c136, %c0_5] : memref<616x128xf32, #tpu.memory_space<vmem>>, vector<32x64xf32>
    %cst_6 = arith.constant dense<0.000000e+00> : vector<8x64xf32>
    %53 = tpu.matmul %17, %52, %cst_6 {dimension_numbers = #tpu.dot_dimension_numbers<[1], [0], [0], [1], [0, 0, 1, 1], [], []>} : vector<8x32xf32>, vector<32x64xf32>, vector<8x64xf32> -> vector<8x64xf32>
    %c129 = arith.constant 129 : index
    %c0_7 = arith.constant 0 : index
    %54 = vector.load %arg1[%c129, %c0_7] : memref<616x128xf32, #tpu.memory_space<vmem>>, vector<1x64xf32>
    %55 = vector.broadcast %54 : vector<1x64xf32> to vector<8x64xf32>
    %56 = arith.addf %53, %55 : vector<8x64xf32>
    %c168 = arith.constant 168 : index
    %c0_8 = arith.constant 0 : index
    %57 = vector.load %arg1[%c168, %c0_8] : memref<616x128xf32, #tpu.memory_space<vmem>>, vector<32x64xf32>
    %cst_9 = arith.constant dense<0.000000e+00> : vector<8x64xf32>
    %58 = tpu.matmul %22, %57, %cst_9 {dimension_numbers = #tpu.dot_dimension_numbers<[1], [0], [0], [1], [0, 0, 1, 1], [], []>} : vector<8x32xf32>, vector<32x64xf32>, vector<8x64xf32> -> vector<8x64xf32>
    %59 = arith.addf %56, %58 : vector<8x64xf32>
    %c200 = arith.constant 200 : index
    %c0_10 = arith.constant 0 : index
    %60 = vector.load %arg1[%c200, %c0_10] : memref<616x128xf32, #tpu.memory_space<vmem>>, vector<32x64xf32>
    %cst_11 = arith.constant dense<0.000000e+00> : vector<8x64xf32>
    %61 = tpu.matmul %27, %60, %cst_11 {dimension_numbers = #tpu.dot_dimension_numbers<[1], [0], [0], [1], [0, 0, 1, 1], [], []>} : vector<8x32xf32>, vector<32x64xf32>, vector<8x64xf32> -> vector<8x64xf32>
    %62 = arith.addf %59, %61 : vector<8x64xf32>
    %c232 = arith.constant 232 : index
    %c0_12 = arith.constant 0 : index
    %63 = vector.load %arg1[%c232, %c0_12] : memref<616x128xf32, #tpu.memory_space<vmem>>, vector<32x64xf32>
    %cst_13 = arith.constant dense<0.000000e+00> : vector<8x64xf32>
    %64 = tpu.matmul %29, %63, %cst_13 {dimension_numbers = #tpu.dot_dimension_numbers<[1], [0], [0], [1], [0, 0, 1, 1], [], []>} : vector<8x32xf32>, vector<32x64xf32>, vector<8x64xf32> -> vector<8x64xf32>
    %65 = arith.addf %62, %64 : vector<8x64xf32>
    %c264 = arith.constant 264 : index
    %c0_14 = arith.constant 0 : index
    %66 = vector.load %arg1[%c264, %c0_14] : memref<616x128xf32, #tpu.memory_space<vmem>>, vector<32x64xf32>
    %cst_15 = arith.constant dense<0.000000e+00> : vector<8x64xf32>
    %67 = tpu.matmul %34, %66, %cst_15 {dimension_numbers = #tpu.dot_dimension_numbers<[1], [0], [0], [1], [0, 0, 1, 1], [], []>} : vector<8x32xf32>, vector<32x64xf32>, vector<8x64xf32> -> vector<8x64xf32>
    %68 = arith.addf %65, %67 : vector<8x64xf32>
    %c296 = arith.constant 296 : index
    %c0_16 = arith.constant 0 : index
    %69 = vector.load %arg1[%c296, %c0_16] : memref<616x128xf32, #tpu.memory_space<vmem>>, vector<32x64xf32>
    %cst_17 = arith.constant dense<0.000000e+00> : vector<8x64xf32>
    %70 = tpu.matmul %39, %69, %cst_17 {dimension_numbers = #tpu.dot_dimension_numbers<[1], [0], [0], [1], [0, 0, 1, 1], [], []>} : vector<8x32xf32>, vector<32x64xf32>, vector<8x64xf32> -> vector<8x64xf32>
    %71 = arith.addf %68, %70 : vector<8x64xf32>
    %c328 = arith.constant 328 : index
    %c0_18 = arith.constant 0 : index
    %72 = vector.load %arg1[%c328, %c0_18] : memref<616x128xf32, #tpu.memory_space<vmem>>, vector<32x64xf32>
    %cst_19 = arith.constant dense<0.000000e+00> : vector<8x64xf32>
    %73 = tpu.matmul %41, %72, %cst_19 {dimension_numbers = #tpu.dot_dimension_numbers<[1], [0], [0], [1], [0, 0, 1, 1], [], []>} : vector<8x32xf32>, vector<32x64xf32>, vector<8x64xf32> -> vector<8x64xf32>
    %74 = arith.addf %71, %73 : vector<8x64xf32>
    %c360 = arith.constant 360 : index
    %c0_20 = arith.constant 0 : index
    %75 = vector.load %arg1[%c360, %c0_20] : memref<616x128xf32, #tpu.memory_space<vmem>>, vector<32x64xf32>
    %cst_21 = arith.constant dense<0.000000e+00> : vector<8x64xf32>
    %76 = tpu.matmul %46, %75, %cst_21 {dimension_numbers = #tpu.dot_dimension_numbers<[1], [0], [0], [1], [0, 0, 1, 1], [], []>} : vector<8x32xf32>, vector<32x64xf32>, vector<8x64xf32> -> vector<8x64xf32>
    %77 = arith.addf %74, %76 : vector<8x64xf32>
    %c392 = arith.constant 392 : index
    %c0_22 = arith.constant 0 : index
    %78 = vector.load %arg1[%c392, %c0_22] : memref<616x128xf32, #tpu.memory_space<vmem>>, vector<32x64xf32>
    %cst_23 = arith.constant dense<0.000000e+00> : vector<8x64xf32>
    %79 = tpu.matmul %51, %78, %cst_23 {dimension_numbers = #tpu.dot_dimension_numbers<[1], [0], [0], [1], [0, 0, 1, 1], [], []>} : vector<8x32xf32>, vector<32x64xf32>, vector<8x64xf32> -> vector<8x64xf32>
    %80 = arith.addf %77, %79 : vector<8x64xf32>
    %cst_24 = arith.constant 0.000000e+00 : f32
    %81 = vector.broadcast %cst_24 : f32 to vector<8x64xf32>
    %82 = arith.maximumf %80, %81 : vector<8x64xf32>
    %c424 = arith.constant 424 : index
    %c0_25 = arith.constant 0 : index
    %83 = vector.load %arg1[%c424, %c0_25] : memref<616x128xf32, #tpu.memory_space<vmem>>, vector<64x64xf32>
    %cst_26 = arith.constant dense<0.000000e+00> : vector<8x64xf32>
    %84 = tpu.matmul %82, %83, %cst_26 {dimension_numbers = #tpu.dot_dimension_numbers<[1], [0], [0], [1], [0, 0, 1, 1], [], []>} : vector<8x64xf32>, vector<64x64xf32>, vector<8x64xf32> -> vector<8x64xf32>
    %c130 = arith.constant 130 : index
    %c0_27 = arith.constant 0 : index
    %85 = vector.load %arg1[%c130, %c0_27] : memref<616x128xf32, #tpu.memory_space<vmem>>, vector<1x64xf32>
    %86 = vector.broadcast %85 : vector<1x64xf32> to vector<8x64xf32>
    %87 = arith.addf %84, %86 : vector<8x64xf32>
    %c0_28 = arith.constant 0 : index
    %c0_29 = arith.constant 0 : index
    %88 = vector.load %arg2[%c0_28, %c0_29] : memref<200x512xf32, #tpu.memory_space<vmem>>, vector<64x512xf32>
    %cst_30 = arith.constant dense<0.000000e+00> : vector<8x512xf32>
    %89 = tpu.matmul %87, %88, %cst_30 {dimension_numbers = #tpu.dot_dimension_numbers<[1], [0], [0], [1], [0, 0, 1, 1], [], []>} : vector<8x64xf32>, vector<64x512xf32>, vector<8x512xf32> -> vector<8x512xf32>
    %c192 = arith.constant 192 : index
    %c0_31 = arith.constant 0 : index
    %90 = vector.load %arg2[%c192, %c0_31] : memref<200x512xf32, #tpu.memory_space<vmem>>, vector<1x512xf32>
    %91 = vector.broadcast %90 : vector<1x512xf32> to vector<8x512xf32>
    %92 = arith.addf %89, %91 : vector<8x512xf32>
    %93 = vector.shape_cast %92 : vector<8x512xf32> to vector<2x4x512xf32>
    %c64 = arith.constant 64 : index
    %c0_32 = arith.constant 0 : index
    %94 = vector.load %arg2[%c64, %c0_32] : memref<200x512xf32, #tpu.memory_space<vmem>>, vector<128x512xf32>
    %c256 = arith.constant 256 : index
    %c0_33 = arith.constant 0 : index
    %95 = vector.load %arg0[%c256, %c0_33] : memref<264x128xf32, #tpu.memory_space<vmem>>, vector<2x4xf32>
    %cst_34 = arith.constant 0.000000e+00 : f32
    %96 = vector.broadcast %cst_34 : f32 to vector<2x128xf32>
    %cst_35 = arith.constant 0.000000e+00 : f32
    %97 = vector.broadcast %cst_35 : f32 to vector<2x128xf32>
    %cst_36 = arith.constant 0.000000e+00 : f32
    %98 = vector.broadcast %cst_36 : f32 to vector<2x128xf32>
    %99 = vector.extract_strided_slice %93 {offsets = [0, 0, 0], sizes = [2, 1, 512], strides = [1, 1, 1]} : vector<2x4x512xf32> to vector<2x1x512xf32>
    %100 = vector.shape_cast %99 : vector<2x1x512xf32> to vector<2x512xf32>
    %cst_37 = arith.constant dense<0.000000e+00> : vector<2x512xf32>
    %101 = tpu.matmul %96, %94, %cst_37 {dimension_numbers = #tpu.dot_dimension_numbers<[1], [0], [0], [1], [0, 0, 1, 1], [], []>} : vector<2x128xf32>, vector<128x512xf32>, vector<2x512xf32> -> vector<2x512xf32>
    %102 = arith.addf %100, %101 : vector<2x512xf32>
    %103 = vector.extract_strided_slice %102 {offsets = [0, 0], sizes = [2, 384], strides = [1, 1]} : vector<2x512xf32> to vector<2x384xf32>
    %104 = arith.negf %103 : vector<2x384xf32>
    %105 = math.exp %104 : vector<2x384xf32>
    %cst_38 = arith.constant 1.000000e+00 : f32
    %106 = vector.broadcast %cst_38 : f32 to vector<2x384xf32>
    %107 = arith.addf %106, %105 : vector<2x384xf32>
    %108 = arith.divf %106, %107 : vector<2x384xf32>
    %109 = vector.extract_strided_slice %102 {offsets = [0, 384], sizes = [2, 128], strides = [1, 1]} : vector<2x512xf32> to vector<2x128xf32>
    %110 = math.tanh %109 : vector<2x128xf32>
    %111 = vector.extract_strided_slice %108 {offsets = [0, 128], sizes = [2, 128], strides = [1, 1]} : vector<2x384xf32> to vector<2x128xf32>
    %112 = arith.mulf %111, %97 : vector<2x128xf32>
    %113 = vector.extract_strided_slice %108 {offsets = [0, 0], sizes = [2, 128], strides = [1, 1]} : vector<2x384xf32> to vector<2x128xf32>
    %114 = arith.mulf %113, %110 : vector<2x128xf32>
    %115 = arith.addf %112, %114 : vector<2x128xf32>
    %116 = vector.extract_strided_slice %108 {offsets = [0, 256], sizes = [2, 128], strides = [1, 1]} : vector<2x384xf32> to vector<2x128xf32>
    %117 = math.tanh %115 : vector<2x128xf32>
    %118 = arith.mulf %116, %117 : vector<2x128xf32>
    %119 = vector.extract_strided_slice %95 {offsets = [0, 0], sizes = [2, 1], strides = [1, 1]} : vector<2x4xf32> to vector<2x1xf32>
    %120 = vector.broadcast %119 : vector<2x1xf32> to vector<2x128xf32>
    %121 = arith.mulf %120, %118 : vector<2x128xf32>
    %122 = arith.addf %98, %121 : vector<2x128xf32>
    %123 = vector.extract_strided_slice %93 {offsets = [0, 1, 0], sizes = [2, 1, 512], strides = [1, 1, 1]} : vector<2x4x512xf32> to vector<2x1x512xf32>
    %124 = vector.shape_cast %123 : vector<2x1x512xf32> to vector<2x512xf32>
    %cst_39 = arith.constant dense<0.000000e+00> : vector<2x512xf32>
    %125 = tpu.matmul %118, %94, %cst_39 {dimension_numbers = #tpu.dot_dimension_numbers<[1], [0], [0], [1], [0, 0, 1, 1], [], []>} : vector<2x128xf32>, vector<128x512xf32>, vector<2x512xf32> -> vector<2x512xf32>
    %126 = arith.addf %124, %125 : vector<2x512xf32>
    %127 = vector.extract_strided_slice %126 {offsets = [0, 0], sizes = [2, 384], strides = [1, 1]} : vector<2x512xf32> to vector<2x384xf32>
    %128 = arith.negf %127 : vector<2x384xf32>
    %129 = math.exp %128 : vector<2x384xf32>
    %cst_40 = arith.constant 1.000000e+00 : f32
    %130 = vector.broadcast %cst_40 : f32 to vector<2x384xf32>
    %131 = arith.addf %130, %129 : vector<2x384xf32>
    %132 = arith.divf %130, %131 : vector<2x384xf32>
    %133 = vector.extract_strided_slice %126 {offsets = [0, 384], sizes = [2, 128], strides = [1, 1]} : vector<2x512xf32> to vector<2x128xf32>
    %134 = math.tanh %133 : vector<2x128xf32>
    %135 = vector.extract_strided_slice %132 {offsets = [0, 128], sizes = [2, 128], strides = [1, 1]} : vector<2x384xf32> to vector<2x128xf32>
    %136 = arith.mulf %135, %115 : vector<2x128xf32>
    %137 = vector.extract_strided_slice %132 {offsets = [0, 0], sizes = [2, 128], strides = [1, 1]} : vector<2x384xf32> to vector<2x128xf32>
    %138 = arith.mulf %137, %134 : vector<2x128xf32>
    %139 = arith.addf %136, %138 : vector<2x128xf32>
    %140 = vector.extract_strided_slice %132 {offsets = [0, 256], sizes = [2, 128], strides = [1, 1]} : vector<2x384xf32> to vector<2x128xf32>
    %141 = math.tanh %139 : vector<2x128xf32>
    %142 = arith.mulf %140, %141 : vector<2x128xf32>
    %143 = vector.extract_strided_slice %95 {offsets = [0, 1], sizes = [2, 1], strides = [1, 1]} : vector<2x4xf32> to vector<2x1xf32>
    %144 = vector.broadcast %143 : vector<2x1xf32> to vector<2x128xf32>
    %145 = arith.mulf %144, %142 : vector<2x128xf32>
    %146 = arith.addf %122, %145 : vector<2x128xf32>
    %147 = vector.extract_strided_slice %93 {offsets = [0, 2, 0], sizes = [2, 1, 512], strides = [1, 1, 1]} : vector<2x4x512xf32> to vector<2x1x512xf32>
    %148 = vector.shape_cast %147 : vector<2x1x512xf32> to vector<2x512xf32>
    %cst_41 = arith.constant dense<0.000000e+00> : vector<2x512xf32>
    %149 = tpu.matmul %142, %94, %cst_41 {dimension_numbers = #tpu.dot_dimension_numbers<[1], [0], [0], [1], [0, 0, 1, 1], [], []>} : vector<2x128xf32>, vector<128x512xf32>, vector<2x512xf32> -> vector<2x512xf32>
    %150 = arith.addf %148, %149 : vector<2x512xf32>
    %151 = vector.extract_strided_slice %150 {offsets = [0, 0], sizes = [2, 384], strides = [1, 1]} : vector<2x512xf32> to vector<2x384xf32>
    %152 = arith.negf %151 : vector<2x384xf32>
    %153 = math.exp %152 : vector<2x384xf32>
    %cst_42 = arith.constant 1.000000e+00 : f32
    %154 = vector.broadcast %cst_42 : f32 to vector<2x384xf32>
    %155 = arith.addf %154, %153 : vector<2x384xf32>
    %156 = arith.divf %154, %155 : vector<2x384xf32>
    %157 = vector.extract_strided_slice %150 {offsets = [0, 384], sizes = [2, 128], strides = [1, 1]} : vector<2x512xf32> to vector<2x128xf32>
    %158 = math.tanh %157 : vector<2x128xf32>
    %159 = vector.extract_strided_slice %156 {offsets = [0, 128], sizes = [2, 128], strides = [1, 1]} : vector<2x384xf32> to vector<2x128xf32>
    %160 = arith.mulf %159, %139 : vector<2x128xf32>
    %161 = vector.extract_strided_slice %156 {offsets = [0, 0], sizes = [2, 128], strides = [1, 1]} : vector<2x384xf32> to vector<2x128xf32>
    %162 = arith.mulf %161, %158 : vector<2x128xf32>
    %163 = arith.addf %160, %162 : vector<2x128xf32>
    %164 = vector.extract_strided_slice %156 {offsets = [0, 256], sizes = [2, 128], strides = [1, 1]} : vector<2x384xf32> to vector<2x128xf32>
    %165 = math.tanh %163 : vector<2x128xf32>
    %166 = arith.mulf %164, %165 : vector<2x128xf32>
    %167 = vector.extract_strided_slice %95 {offsets = [0, 2], sizes = [2, 1], strides = [1, 1]} : vector<2x4xf32> to vector<2x1xf32>
    %168 = vector.broadcast %167 : vector<2x1xf32> to vector<2x128xf32>
    %169 = arith.mulf %168, %166 : vector<2x128xf32>
    %170 = arith.addf %146, %169 : vector<2x128xf32>
    %171 = vector.extract_strided_slice %93 {offsets = [0, 3, 0], sizes = [2, 1, 512], strides = [1, 1, 1]} : vector<2x4x512xf32> to vector<2x1x512xf32>
    %172 = vector.shape_cast %171 : vector<2x1x512xf32> to vector<2x512xf32>
    %cst_43 = arith.constant dense<0.000000e+00> : vector<2x512xf32>
    %173 = tpu.matmul %166, %94, %cst_43 {dimension_numbers = #tpu.dot_dimension_numbers<[1], [0], [0], [1], [0, 0, 1, 1], [], []>} : vector<2x128xf32>, vector<128x512xf32>, vector<2x512xf32> -> vector<2x512xf32>
    %174 = arith.addf %172, %173 : vector<2x512xf32>
    %175 = vector.extract_strided_slice %174 {offsets = [0, 0], sizes = [2, 384], strides = [1, 1]} : vector<2x512xf32> to vector<2x384xf32>
    %176 = arith.negf %175 : vector<2x384xf32>
    %177 = math.exp %176 : vector<2x384xf32>
    %cst_44 = arith.constant 1.000000e+00 : f32
    %178 = vector.broadcast %cst_44 : f32 to vector<2x384xf32>
    %179 = arith.addf %178, %177 : vector<2x384xf32>
    %180 = arith.divf %178, %179 : vector<2x384xf32>
    %181 = vector.extract_strided_slice %174 {offsets = [0, 384], sizes = [2, 128], strides = [1, 1]} : vector<2x512xf32> to vector<2x128xf32>
    %182 = math.tanh %181 : vector<2x128xf32>
    %183 = vector.extract_strided_slice %180 {offsets = [0, 128], sizes = [2, 128], strides = [1, 1]} : vector<2x384xf32> to vector<2x128xf32>
    %184 = arith.mulf %183, %163 : vector<2x128xf32>
    %185 = vector.extract_strided_slice %180 {offsets = [0, 0], sizes = [2, 128], strides = [1, 1]} : vector<2x384xf32> to vector<2x128xf32>
    %186 = arith.mulf %185, %182 : vector<2x128xf32>
    %187 = arith.addf %184, %186 : vector<2x128xf32>
    %188 = vector.extract_strided_slice %180 {offsets = [0, 256], sizes = [2, 128], strides = [1, 1]} : vector<2x384xf32> to vector<2x128xf32>
    %189 = math.tanh %187 : vector<2x128xf32>
    %190 = arith.mulf %188, %189 : vector<2x128xf32>
    %191 = vector.extract_strided_slice %95 {offsets = [0, 3], sizes = [2, 1], strides = [1, 1]} : vector<2x4xf32> to vector<2x1xf32>
    %192 = vector.broadcast %191 : vector<2x1xf32> to vector<2x128xf32>
    %193 = arith.mulf %192, %190 : vector<2x128xf32>
    %194 = arith.addf %170, %193 : vector<2x128xf32>
    %c488 = arith.constant 488 : index
    %c0_45 = arith.constant 0 : index
    %195 = vector.load %arg1[%c488, %c0_45] : memref<616x128xf32, #tpu.memory_space<vmem>>, vector<128x128xf32>
    %cst_46 = arith.constant dense<0.000000e+00> : vector<2x128xf32>
    %196 = tpu.matmul %194, %195, %cst_46 {dimension_numbers = #tpu.dot_dimension_numbers<[1], [0], [0], [1], [0, 0, 1, 1], [], []>} : vector<2x128xf32>, vector<128x128xf32>, vector<2x128xf32> -> vector<2x128xf32>
    %c131 = arith.constant 131 : index
    %c0_47 = arith.constant 0 : index
    %197 = vector.load %arg1[%c131, %c0_47] : memref<616x128xf32, #tpu.memory_space<vmem>>, vector<1x128xf32>
    %198 = vector.broadcast %197 : vector<1x128xf32> to vector<2x128xf32>
    %199 = arith.addf %196, %198 : vector<2x128xf32>
    %c0_48 = arith.constant 0 : index
    %c0_49 = arith.constant 0 : index
    %200 = vector.load %arg3[%c0_48, %c0_49] : memref<2x128xf32, #tpu.memory_space<vmem>>, vector<2x128xf32>
    tpu.vector_store %arg3[%c0_48, %c0_49], %199 {strides = array<i32>} : memref<2x128xf32, #tpu.memory_space<vmem>>, vector<2x128xf32>,
    return
  }
}

</mosaic_0001>

<bundles_post_ra>
// kernel: lrcn_forward.1
= control target key start
LH: loop header
LB: loop body
LE: loop exit
PB: predicated region body
PF: predicated region fallthrough
CT: control target
= control target key end

     0   :  { %s3667_s0 = inlined_call_operand.vmem [shape: f32[264,128], index: 0, kind: input, shape index: {}]   ;;  %s3668_s1 = inlined_call_operand.vmem [shape: f32[616,128], index: 1, kind: input, shape index: {}]   ;;  %s3669_s2 = inlined_call_operand.vmem [shape: f32[200,512], index: 2, kind: input, shape index: {}]   ;;  %s3670_s3 = inlined_call_operand.hbm [shape: f32[2,128], index: 3, kind: output, shape index: {}]  }
   0x1   :  { %v62_v0 = vld [vmem:[%s3668_s1 + $0x78] sm:$0xff]  ;;  %v61_v1 = vld [vmem:[%s3668_s1 + $0x70] sm:$0xff]  ;;  %v60_v2 = vld [vmem:[%s3668_s1 + $0x68] sm:$0xff] }
   0x2   :  { %65 = vmatpush.msra.mxu0 %v62_v0  ;;  %2059 = vmatpush.msra.mxu2 %v62_v0  ;;  %v59_v3 = vld [vmem:[%s3668_s1 + $0x60] sm:$0xff]  ;;  %v58_v4 = vld [vmem:[%s3668_s1 + $0x58] sm:$0xff] }
   0x4   :  { %66 = vmatpush.msra.mxu0 %v61_v1  ;;  %2060 = vmatpush.msra.mxu2 %v61_v1 }
   0x6   :  { %67 = vmatpush.msra.mxu0 %v60_v2  ;;  %2061 = vmatpush.msra.mxu2 %v60_v2 }
   0x8   :  { %68 = vmatpush.msra.mxu0 %v59_v3  ;;  %2062 = vmatpush.msra.mxu2 %v59_v3 }
   0x9   :  { %8 = vsyncpa [#allocation3], 0  ;;  %v57_v5 = vld [vmem:[%s3668_s1 + $0x50] sm:$0xff]  ;;  %v56_v6 = vld [vmem:[%s3668_s1 + $0x48] sm:$0xff]  ;;  %vm266_vm0 = vcmask 1042432   ;;  %vm458_vm1 = vcmask 1041409  }
   0xa   :  { %69 = vmatpush.msra.mxu0 %v58_v4  ;;  %2063 = vmatpush.msra.mxu2 %v58_v4  ;;  %v55_v7 = vld [vmem:[%s3668_s1 + $0x40] sm:$0xff]  ;;  %v54_v8 = vld [vmem:[%s3668_s1 + $0x38] sm:$0xff]  ;;  %v53_v9 = vld [vmem:[%s3668_s1 + $0x30] sm:$0xff]  ;;  %vm461_vm2 = vcmask 1042434   ;;  %vm464_vm3 = vcmask 1043459   ;;  %vm467_vm4 = vcmask 1044484  }
   0xb   :  { %v52_v10 = vld [vmem:[%s3668_s1 + $0x28] sm:$0xff]  ;;  %v51_v11 = vld [vmem:[%s3668_s1 + $0x20] sm:$0xff]  ;;  %v50_v12 = vld [vmem:[%s3668_s1 + $0x18] sm:$0xff]  ;;  %vm470_vm5 = vcmask 1045509   ;;  %vm473_vm6 = vcmask 1046534   ;;  %vm475_vm7 = vcmask 1047559  }
   0xc   :  { %70 = vmatpush.msra.mxu0 %v57_v5  ;;  %2064 = vmatpush.msra.mxu2 %v57_v5  ;;  %v49_v13 = vld [vmem:[%s3668_s1 + $0x10] sm:$0xff]  ;;  %v48_v14 = vld [vmem:[%s3668_s1 + $0x8] sm:$0xff]  ;;  %v47_v15 = vld [vmem:[%s3668_s1] sm:$0xff]  ;;  %vm477_vm8 = vcmask 261120   ;;  %vm878_vm9 = vcmask 523264   ;;  %vm1034_vm10 = vcmask 1043456  }
   0xd   :  { %v15_v16 = vld [vmem:[%s3667_s0] sm:$0xff]  ;;  %v16_v17 = vld [vmem:[%s3667_s0 + $0x8] sm:$0xff]  ;;  %v17_v18 = vld [vmem:[%s3667_s0 + $0x10] sm:$0xff]  ;;  %s2225_s12 = smov [#allocation2]   ;;  %s2019_s16 = sshll.u32 %s3670_s3, 4  ;;  %s2020_s16 = int_to_ptr.hbm [resolvable:$true] %s2019_s16 }
   0xe   :  { %71 = vmatpush.msra.mxu0 %v56_v6  ;;  %2065 = vmatpush.msra.mxu2 %v56_v6  ;;  %v18_v19 = vld [vmem:[%s3667_s0 + $0x18] sm:$0xff]  ;;  %v19_v20 = vld [vmem:[%s3667_s0 + $0x20] sm:$0xff]  ;;  %v20_v21 = vld [vmem:[%s3667_s0 + $0x28] sm:$0xff]  ;;  %s2017_s13 = sshll.u32 %s2225_s12, 4  ;;  %s2018_s13 = int_to_ptr.vmem [resolvable:$true] %s2017_s13 }
   0xf   :  { %v21_v22 = vld [vmem:[%s3667_s0 + $0x30] sm:$0xff]  ;;  %v22_v23 = vld [vmem:[%s3667_s0 + $0x38] sm:$0xff]  ;;  %v23_v24 = vld [vmem:[%s3667_s0 + $0x40] sm:$0xff] }
  0x10   :  { %72 = vmatpush.msra.mxu0 %v55_v7  ;;  %2066 = vmatpush.msra.mxu2 %v55_v7  ;;  %v24_v25 = vld [vmem:[%s3667_s0 + $0x48] sm:$0xff]  ;;  %v25_v26 = vld [vmem:[%s3667_s0 + $0x50] sm:$0xff]  ;;  %v26_v27 = vld [vmem:[%s3667_s0 + $0x58] sm:$0xff] }
  0x11   :  { %v27_v28 = vld [vmem:[%s3667_s0 + $0x60] sm:$0xff]  ;;  %v28_v29 = vld [vmem:[%s3667_s0 + $0x68] sm:$0xff]  ;;  %v29_v30 = vld [vmem:[%s3667_s0 + $0x70] sm:$0xff] }
  0x12   :  { %73 = vmatpush.msra.mxu0 %v54_v8  ;;  %2067 = vmatpush.msra.mxu2 %v54_v8  ;;  %v30_v31 = vld [vmem:[%s3667_s0 + $0x78] sm:$0xff]  ;;  %v31_v33 = vld [vmem:[%s3667_s0 + $0x80] sm:$0xff]  ;;  %v32_v35 = vld [vmem:[%s3667_s0 + $0x88] sm:$0xff] }
  0x13   :  { %v33_v37 = vld [vmem:[%s3667_s0 + $0x90] sm:$0xff]  ;;  %v34_v39 = vld [vmem:[%s3667_s0 + $0x98] sm:$0xff]  ;;  %v35_v41 = vld [vmem:[%s3667_s0 + $0xa0] sm:$0xff] }
  0x14   :  { %74 = vmatpush.msra.mxu0 %v53_v9  ;;  %2068 = vmatpush.msra.mxu2 %v53_v9  ;;  %v44_v42 = vld [vmem:[%s3667_s0 + $0xe8] sm:$0xff]  ;;  %v45_v45 = vld [vmem:[%s3667_s0 + $0xf0] sm:$0xff]  ;;  %v2369_v46 = vld [vmem:[%s3668_s1 + $0x80] ss:$0 sm:$0xff] }
  0x15   :  { %v36_v44 = vld [vmem:[%s3667_s0 + $0xa8] sm:$0xff]  ;;  %v37_v48 = vld [vmem:[%s3667_s0 + $0xb0] sm:$0xff]  ;;  %v46_v54 = vld [vmem:[%s3667_s0 + $0xf8] sm:$0xff] }
  0x16   :  { %75 = vmatpush.msra.mxu0 %v52_v10  ;;  %2069 = vmatpush.msra.mxu2 %v52_v10  ;;  %v38_v57 = vld [vmem:[%s3667_s0 + $0xb8] sm:$0xff]  ;;  %v39_v3 = vld [vmem:[%s3667_s0 + $0xc0] sm:$0xff] }
  0x18   :  { %76 = vmatpush.msra.mxu0 %v51_v11  ;;  %2070 = vmatpush.msra.mxu2 %v51_v11 }
  0x1a   :  { %77 = vmatpush.msra.mxu0 %v50_v12  ;;  %2071 = vmatpush.msra.mxu2 %v50_v12 }
  0x1c   :  { %78 = vmatpush.msra.mxu0 %v49_v13  ;;  %2072 = vmatpush.msra.mxu2 %v49_v13 }
  0x1e   :  { %79 = vmatpush.msra.mxu0 %v48_v14  ;;  %2073 = vmatpush.msra.mxu2 %v48_v14 }
  0x20   :  { %80 = vmatpush.msra.mxu0 %v47_v15  ;;  %2074 = vmatpush.msra.mxu2 %v47_v15  ;;  %v40_v15 = vld [vmem:[%s3667_s0 + $0xc8] sm:$0xff] }
  0x21   :  { %81 = vmatmul.f32.vlgmr.msra.gmra.mxu0 %v15_v16  ;;  %168 = vmatmul.f32.vlgmr.msra.gmra.mxu2 %v44_v42 }
  0x29   :  { %84 = vmatmul.f32.gmra.mxu0 %v16_v17  ;;  %171 = vmatmul.f32.gmra.mxu2 %v45_v45 }
  0x31   :  { %87 = vmatmul.f32.gmra.mxu0 %v17_v18  ;;  %174 = vmatmul.f32.gmra.mxu2 %v46_v54 }
  0x39   :  { %90 = vmatmul.f32.gmra.mxu0 %v18_v19 }
  0x41   :  { %93 = vmatmul.f32.gmra.mxu0 %v19_v20 }
  0x49   :  { %96 = vmatmul.f32.gmra.mxu0 %v20_v21 }
  0x51   :  { %99 = vmatmul.f32.gmra.mxu0 %v21_v22 }
  0x59   :  { %102 = vmatmul.f32.gmra.mxu0 %v22_v23 }
  0x61   :  { %105 = vmatmul.f32.gmra.mxu0 %v23_v24 }
  0x69   :  { %108 = vmatmul.f32.gmra.mxu0 %v24_v25 }
  0x71   :  { %111 = vmatmul.f32.gmra.mxu0 %v25_v26 }
  0x79   :  { %114 = vmatmul.f32.gmra.mxu0 %v26_v27 }
  0x81   :  { %117 = vmatmul.f32.gmra.mxu0 %v27_v28 }
  0x89   :  { %120 = vmatmul.f32.gmra.mxu0 %v28_v29 }
  0x91   :  { %123 = vmatmul.f32.gmra.mxu0 %v29_v30 }
  0x99   :  { %126 = vmatmul.f32.gmra.mxu0 %v30_v31 }
  0x9e   :  { %v82_v32 = vpop.f32.mrf.mxu0 }
  0x9f   :  { %v83_v4 = vadd.f32 %v2369_v46, %v82_v32 }
  0xa1   :  { %129 = vmatmul.f32.gmra.mxu0 %v31_v33  ;;  %v2405_v8 = vmax.f32 %v83_v4, 0.0 }
  0xa6   :  { %v85_v34 = vpop.f32.mrf.mxu0 }
  0xa7   :  { %v86_v60 = vadd.f32 %v2369_v46, %v85_v34 }
  0xa9   :  { %132 = vmatmul.f32.gmra.mxu0 %v32_v35  ;;  %v2392_v63 = vmax.f32 %v86_v60, 0.0 }
  0xab   :  { %v218_v6 = vrot.slane %v2392_v63, 5 }
  0xad   :  { %v234_v11 = vmax.f32 %v2405_v8, %v218_v6  ;;  %v235_v20 = vmax.f32 %v2392_v63, %v218_v6 }
  0xae   :  { %v88_v36 = vpop.f32.mrf.mxu0 }
  0xaf   :  { %v89_v12 = vadd.f32 %v2369_v46, %v88_v36  ;;  %v363_v22 = vrot.slane %v234_v11, 1  ;;  %v395_v30 = vrot.slane %v235_v20, 1  ;;  %v594_v34 = vrot.slane %v234_v11, 5 }
  0xb1   :  { %135 = vmatmul.f32.gmra.mxu0 %v33_v37  ;;  %v180_v23 = vmax.f32 %v89_v12, 0.0  ;;  %v379_v33 = vmax.f32 %v234_v11, %v363_v22 }
  0xb3   :  { %v267_v35 = vrot.slane %v180_v23, 5  ;;  %v642_v54 = vrot.slane %v379_v33, 6 }
  0xb6   :  { %v91_v38 = vpop.f32.mrf.mxu0 }
  0xb7   :  { %v92_v13 = vadd.f32 %v2369_v46, %v91_v38  ;;  %v41_v38 = vld [vmem:[%s3667_s0 + $0xd0] sm:$0xff] }
  0xb9   :  { %138 = vmatmul.f32.gmra.mxu0 %v34_v39  ;;  %v181_v24 = vmax.f32 %v92_v13, 0.0 }
  0xbb   :  { %v268_v36 = vrot.slane %v181_v24, 5 }
  0xbe   :  { %v94_v40 = vpop.f32.mrf.mxu0 }
  0xbf   :  { %v95_v0 = vadd.f32 %v2369_v46, %v94_v40 }
  0xc1   :  { %141 = vmatmul.f32.gmra.mxu0 %v35_v41  ;;  %v2403_v7 = vmax.f32 %v95_v0, 0.0 }
  0xc3   :  { %v332_v13 = vrot.slane %v2403_v7, 1 }
  0xc6   :  { %v97_v43 = vpop.f32.mrf.mxu0 }
  0xc7   :  { %v98_v49 = vadd.f32 %v2369_v46, %v97_v43 }
  0xc9   :  { %144 = vmatmul.f32.gmra.mxu0 %v36_v44  ;;  %v2376_v52 = vmax.f32 %v98_v49, 0.0 }
  0xcb   :  { %v219_v5 = vrot.slane %v2376_v52, 5 }
  0xcd   :  { %v236_v9 = vmax.f32 %v2403_v7, %v219_v5  ;;  %v237_v10 = vmax.f32 %v2376_v52, %v219_v5 }
  0xce   :  { %v100_v47 = vpop.f32.mrf.mxu0 }
  0xcf   :  { %v101_v50 = vadd.f32 %v2369_v46, %v100_v47  ;;  %v364_v18 = vrot.slane %v236_v9, 1  ;;  %v396_v19 = vrot.slane %v237_v10, 1  ;;  %v595_v29 = vrot.slane %v236_v9, 4 }
  0xd1   :  { %v184_v51 = vmax.f32 %v101_v50, 0.0  ;;  %147 = vmatmul.f32.gmra.mxu0 %v37_v48  ;;  %v380_v27 = vmax.f32 %v236_v9, %v364_v18  ;;  %v412_v28 = vmax.f32 %v237_v10, %v396_v19  ;;  %v596_v43 = vsel %vm458_vm1, %v595_v29, %v594_v34  ;;  %v42_v9 = vld [vmem:[%s3667_s0 + $0xd8] sm:$0xff] }
  0xd3   :  { %v2378_v53 = vrot.slane %v184_v51, 5  ;;  %v643_v44 = vrot.slane %v380_v27, 5  ;;  %v691_v45 = vrot.slane %v412_v28, 7  ;;  %v43_v27 = vld [vmem:[%s3667_s0 + $0xe0] sm:$0xff]  ;;  %v457_v28 = vrot.slane %v2403_v7, 7 }
  0xd5   :  { %v309_v55 = vmax.f32 %v2376_v52, %v2378_v53 }
  0xd6   :  { %v103_v56 = vpop.f32.mrf.mxu0 }
  0xd7   :  { %v104_v58 = vadd.f32 %v2369_v46, %v103_v56  ;;  %v307_v56 = vmax.f32 %v2392_v63, %v267_v35  ;;  %v741_v0 = vrot.slane %v309_v55, 6 }
  0xd9   :  { %v185_v59 = vmax.f32 %v104_v58, 0.0  ;;  %150 = vmatmul.f32.gmra.mxu0 %v38_v57  ;;  %v269_v57 = vsel %vm266_vm0, %v267_v35, %v268_v36  ;;  %v740_v5 = vrot.slane %v307_v56, 7 }
  0xdb   :  { %v271_v61 = vrot.slane %v185_v59, 5  ;;  %v742_v55 = vsel %vm458_vm1, %v741_v0, %v740_v5 }
  0xdd   :  { %v272_v62 = vsel %vm266_vm0, %v2378_v53, %v271_v61  ;;  %v644_v61 = vsel %vm458_vm1, %v643_v44, %v642_v54  ;;  %v331_v53 = vrot.slane %v2405_v8, 1 }
  0xde   :  { %v2395_v1 = vmax.f32 %v184_v51, %v272_v62  ;;  %v106_v2 = vpop.f32.mrf.mxu0  ;;  %v411_v51 = vmax.f32 %v235_v20, %v395_v30 }
  0xdf   :  { %v107_v16 = vadd.f32 %v2369_v46, %v106_v2  ;;  %v308_v2 = vmax.f32 %v180_v23, %v269_v57  ;;  %v347_v19 = vmax.f32 %v2405_v8, %v331_v53 }
  0xe0   :  { %v692_v62 = vsel %vm458_vm1, %v691_v45, %v411_v51  ;;  %v428_v10 = vrot.slane %v2395_v1, 1 }
  0xe1   :  { %153 = vmatmul.f32.gmra.mxu0 %v39_v3  ;;  %v2418_v25 = vmax.f32 %v107_v16, 0.0  ;;  %v427_v12 = vrot.slane %v308_v2, 1  ;;  %v512_v30 = vrot.slane %v347_v19, 1 }
  0xe3   :  { %v333_v16 = vrot.slane %v2418_v25, 1  ;;  %v443_v20 = vmax.f32 %v308_v2, %v427_v12 }
  0xe5   :  { %v349_v23 = vmax.f32 %v2418_v25, %v333_v16  ;;  %v830_v33 = vrot.slane %v443_v20, 2 }
  0xe6   :  { %v109_v14 = vpop.f32.mrf.mxu0 }
  0xe7   :  { %v110_v17 = vadd.f32 %v2369_v46, %v109_v14 }
  0xe9   :  { %v187_v21 = vmax.f32 %v110_v17, 0.0  ;;  %156 = vmatmul.f32.gmra.mxu0 %v40_v15  ;;  %v444_v17 = vmax.f32 %v2395_v1, %v428_v10 }
  0xeb   :  { %v220_v26 = vrot.slane %v187_v21, 5  ;;  %v831_v29 = vrot.slane %v444_v17, 1  ;;  %v789_v35 = vrot.slane %v444_v17, 7 }
  0xed   :  { %v238_v31 = vmax.f32 %v2418_v25, %v220_v26  ;;  %v239_v32 = vmax.f32 %v187_v21, %v220_v26 }
  0xee   :  { %v112_v37 = vpop.f32.mrf.mxu0 }
  0xef   :  { %v365_v39 = vrot.slane %v238_v31, 1  ;;  %v397_v40 = vrot.slane %v239_v32, 1  ;;  %v597_v41 = vrot.slane %v238_v31, 3  ;;  %v113_v42 = vadd.f32 %v2369_v46, %v112_v37 }
  0xf0   :  { %v553_v37 = vrot.slane %v347_v19, 3 }
  0xf1   :  { %v381_v47 = vmax.f32 %v238_v31, %v365_v39  ;;  %v413_v48 = vmax.f32 %v239_v32, %v397_v40  ;;  %v188_v49 = vmax.f32 %v113_v42, 0.0  ;;  %159 = vmatmul.f32.gmra.mxu0 %v41_v38  ;;  %v2427_v50 = vsel %vm461_vm2, %v597_v41, %v596_v43 }
  0xf2   :  { %v460_v31 = vrot.slane %v2418_v25, 6  ;;  %v556_v38 = vrot.slane %v349_v23, 1  ;;  %v459_v40 = vsel %vm458_vm1, %v457_v28, %v2405_v8  ;;  %v514_v43 = vrot.slane %v349_v23, 7 }
  0xf3   :  { %v645_v58 = vrot.slane %v381_v47, 4  ;;  %v693_v59 = vrot.slane %v413_v48, 6  ;;  %v273_v60 = vrot.slane %v188_v49, 5  ;;  %v790_v47 = vsel %vm458_vm1, %v789_v35, %v443_v20 }
  0xf4   :  { %v462_v45 = vsel %vm461_vm2, %v460_v31, %v459_v40 }
  0xf5   :  { %v2437_v3 = vsel %vm461_vm2, %v693_v59, %v692_v62  ;;  %v311_v4 = vmax.f32 %v187_v21, %v273_v60  ;;  %v2440_v63 = vsel %vm461_vm2, %v645_v58, %v644_v61  ;;  %v348_v21 = vmax.f32 %v2403_v7, %v332_v13 }
  0xf6   :  { %v115_v6 = vpop.f32.mrf.mxu0  ;;  %v832_v7 = vsel %vm458_vm1, %v831_v29, %v830_v33 }
  0xf7   :  { %v743_v11 = vrot.slane %v311_v4, 5  ;;  %v116_v52 = vadd.f32 %v2369_v46, %v115_v6  ;;  %v554_v34 = vrot.slane %v348_v21, 2  ;;  %v513_v57 = vsel %vm458_vm1, %v348_v21, %v512_v30 }
  0xf8   :  { %v515_v61 = vsel %vm461_vm2, %v514_v43, %v513_v57 }
  0xf9   :  { %v2451_v14 = vsel %vm461_vm2, %v743_v11, %v742_v55  ;;  %v189_v15 = vmax.f32 %v116_v52, 0.0  ;;  %162 = vmatmul.f32.gmra.mxu0 %v42_v9  ;;  %v555_v51 = vsel %vm458_vm1, %v554_v34, %v553_v37 }
  0xfa   :  { %v557_v56 = vsel %vm461_vm2, %v556_v38, %v555_v51 }
  0xfb   :  { %v274_v18 = vrot.slane %v189_v15, 5 }
  0xfd   :  { %v275_v22 = vsel %vm266_vm0, %v273_v60, %v274_v18 }
  0xfe   :  { %v312_v24 = vmax.f32 %v188_v49, %v275_v22  ;;  %v118_v26 = vpop.f32.mrf.mxu0 }
  0xff   :  { %v119_v1 = vadd.f32 %v2369_v46, %v118_v26 }
 0x100   :  { %v429_v32 = vrot.slane %v312_v24, 1 }
 0x101   :  { %v190_v36 = vmax.f32 %v119_v1, 0.0  ;;  %165 = vmatmul.f32.gmra.mxu0 %v43_v27 }
 0x102   :  { %v445_v39 = vmax.f32 %v312_v24, %v429_v32 }
 0x103   :  { %v334_v41 = vrot.slane %v190_v36, 1  ;;  %v463_v42 = vrot.slane %v190_v36, 5 }
 0x104   :  { %v791_v44 = vrot.slane %v445_v39, 6  ;;  %v833_v25 = vsel %vm461_vm2, %v445_v39, %v832_v7 }
 0x105   :  { %v350_v48 = vmax.f32 %v190_v36, %v334_v41  ;;  %v465_v49 = vsel %vm464_vm3, %v463_v42, %v462_v45 }
 0x106   :  { %v792_v54 = vsel %vm461_vm2, %v791_v44, %v790_v47  ;;  %v121_v8 = vpop.f32.mrf.mxu0 }
 0x107   :  { %v516_v58 = vrot.slane %v350_v48, 6  ;;  %v122_v59 = vadd.f32 %v2369_v46, %v121_v8  ;;  %v558_v60 = vsel %vm464_vm3, %v350_v48, %v557_v56 }
 0x109   :  { %v191_v62 = vmax.f32 %v122_v59, 0.0  ;;  %v517_v0 = vsel %vm464_vm3, %v516_v58, %v515_v61 }
 0x10b   :  { %v221_v2 = vrot.slane %v191_v62, 5 }
 0x10d   :  { %v240_v4 = vmax.f32 %v190_v36, %v221_v2  ;;  %v241_v5 = vmax.f32 %v191_v62, %v221_v2 }
 0x10e   :  { %v124_v6 = vpop.f32.mrf.mxu0 }
 0x10f   :  { %v366_v9 = vrot.slane %v240_v4, 1  ;;  %v398_v10 = vrot.slane %v241_v5, 1  ;;  %v599_v11 = vrot.slane %v240_v4, 2  ;;  %v125_v52 = vadd.f32 %v2369_v46, %v124_v6 }
 0x111   :  { %v382_v53 = vmax.f32 %v240_v4, %v366_v9  ;;  %v414_v55 = vmax.f32 %v241_v5, %v398_v10  ;;  %v192_v12 = vmax.f32 %v125_v52, 0.0  ;;  %v600_v13 = vsel %vm464_vm3, %v599_v11, %v2427_v50 }
 0x113   :  { %v647_v15 = vrot.slane %v382_v53, 3  ;;  %v695_v16 = vrot.slane %v414_v55, 5  ;;  %v276_v17 = vrot.slane %v192_v12, 5 }
 0x115   :  { %v313_v18 = vmax.f32 %v191_v62, %v276_v17  ;;  %v648_v19 = vsel %vm464_vm3, %v647_v15, %v2440_v63  ;;  %v696_v20 = vsel %vm464_vm3, %v695_v16, %v2437_v3 }
 0x116   :  { %v127_v21 = vpop.f32.mrf.mxu0 }
 0x117   :  { %v745_v22 = vrot.slane %v313_v18, 4  ;;  %v128_v23 = vadd.f32 %v2369_v46, %v127_v21 }
 0x119   :  { %v746_v24 = vsel %vm464_vm3, %v745_v22, %v2451_v14  ;;  %v193_v26 = vmax.f32 %v128_v23, 0.0  ;;  %v454_v22 = vld [vmem:[%s3668_s1 + $0xa0] sm:$0xff]  ;;  %v169_v23 = vpop.f32.mrf.mxu2 }
 0x11a   :  { %492 = vmatpush.msra.mxu1 %v454_v22 }
 0x11b   :  { %v277_v27 = vrot.slane %v193_v26, 5  ;;  %v452_v26 = vld [vmem:[%s3668_s1 + $0x90] sm:$0xff] }
 0x11d   :  { %v278_v50 = vsel %vm266_vm0, %v276_v17, %v277_v27  ;;  %v503_v27 = vld [vmem:[%s3668_s1 + $0xc0] sm:$0xff] }
 0x11e   :  { %v314_v28 = vmax.f32 %v192_v12, %v278_v50  ;;  %v130_v29 = vpop.f32.mrf.mxu0  ;;  %v552_v50 = vld [vmem:[%s3668_s1 + $0xe0] sm:$0xff]  ;;  %540 = vmatpush.msrb.mxu2 %v503_v27 }
 0x11f   :  { %v131_v1 = vadd.f32 %v2369_v46, %v130_v29  ;;  %581 = vmatpush.msra.mxu3 %v552_v50  ;;  %v502_v29 = vld [vmem:[%s3668_s1 + $0xb8] sm:$0xff] }
 0x120   :  { %v430_v30 = vrot.slane %v314_v28, 1  ;;  %541 = vmatpush.msrb.mxu2 %v502_v29 }
 0x121   :  { %v194_v63 = vmax.f32 %v131_v1, 0.0  ;;  %v551_v1 = vld [vmem:[%s3668_s1 + $0xd8] sm:$0xff] }
 0x122   :  { %v446_v31 = vmax.f32 %v314_v28, %v430_v30  ;;  %v451_v28 = vld [vmem:[%s3668_s1 + $0x88] sm:$0xff]  ;;  %582 = vmatpush.msra.mxu3 %v551_v1 }
 0x123   :  { %v335_v3 = vrot.slane %v194_v63, 1  ;;  %v466_v32 = vrot.slane %v194_v63, 4 }
 0x124   :  { %v793_v33 = vrot.slane %v446_v31, 5  ;;  %v834_v34 = vrot.slane %v446_v31, 7  ;;  %v550_v31 = vld [vmem:[%s3668_s1 + $0xd0] sm:$0xff] }
 0x125   :  { %v351_v35 = vmax.f32 %v194_v63, %v335_v3  ;;  %v2493_v36 = vsel %vm467_vm4, %v466_v32, %v465_v49  ;;  %v593_v3 = vld [vmem:[%s3668_s1 + $0x100] sm:$0xff]  ;;  %v500_v32 = vld [vmem:[%s3668_s1 + $0xa8] sm:$0xff]  ;;  %583 = vmatpush.msra.mxu3 %v550_v31 }
 0x126   :  { %v133_v14 = vpop.f32.mrf.mxu0  ;;  %v794_v37 = vsel %vm464_vm3, %v793_v33, %v792_v54  ;;  %v835_v38 = vsel %vm464_vm3, %v834_v34, %v833_v25  ;;  %v549_v33 = vld [vmem:[%s3668_s1 + $0xc8] sm:$0xff]  ;;  %v592_v34 = vld [vmem:[%s3668_s1 + $0xf8] sm:$0xff] }
 0x127   :  { %v518_v39 = vrot.slane %v351_v35, 5  ;;  %v559_v40 = vrot.slane %v351_v35, 7  ;;  %v134_v7 = vadd.f32 %v2369_v46, %v133_v14  ;;  %v172_v35 = vpop.f32.mrf.mxu2  ;;  %584 = vmatpush.msra.mxu3 %v549_v33 }
 0x129   :  { %v195_v41 = vmax.f32 %v134_v7, 0.0  ;;  %v2499_v42 = vsel %vm467_vm4, %v518_v39, %v517_v0  ;;  %v2502_v43 = vsel %vm467_vm4, %v559_v40, %v558_v60  ;;  %v682_v39 = vld [vmem:[%s3668_s1 + $0x140] sm:$0xff]  ;;  %v590_v40 = vld [vmem:[%s3668_s1 + $0xe8] sm:$0xff]  ;;  %v632_v7 = vld [vmem:[%s3668_s1 + $0x118] sm:$0xff] }
 0x12a   :  { %719 = vmatpush.msrb.mxu3 %v682_v39 }
 0x12b   :  { %v222_v44 = vrot.slane %v195_v41, 5 }
 0x12d   :  { %v242_v45 = vmax.f32 %v194_v63, %v222_v44  ;;  %v243_v47 = vmax.f32 %v195_v41, %v222_v44  ;;  %v501_v63 = vld [vmem:[%s3668_s1 + $0xb0] sm:$0xff] }
 0x12e   :  { %v136_v48 = vpop.f32.mrf.mxu0  ;;  %542 = vmatpush.msrb.mxu2 %v501_v63 }
 0x12f   :  { %v367_v49 = vrot.slane %v242_v45, 1  ;;  %v399_v51 = vrot.slane %v243_v47, 1  ;;  %v137_v54 = vadd.f32 %v2369_v46, %v136_v48  ;;  %v631_v48 = vld [vmem:[%s3668_s1 + $0x110] sm:$0xff] }
 0x130   :  { %543 = vmatpush.msrb.mxu2 %v500_v32 }
 0x131   :  { %v383_v25 = vmax.f32 %v242_v45, %v367_v49  ;;  %v415_v8 = vmax.f32 %v243_v47, %v399_v51  ;;  %v196_v56 = vmax.f32 %v137_v54, 0.0  ;;  %v2506_v57 = vsel %vm467_vm4, %v367_v49, %v600_v13  ;;  %v680_v49 = vld [vmem:[%s3668_s1 + $0x130] sm:$0xff]  ;;  %v630_v51 = vld [vmem:[%s3668_s1 + $0x108] sm:$0xff] }
 0x132   :  { %v679_v54 = vld [vmem:[%s3668_s1 + $0x128] sm:$0xff] }
 0x133   :  { %v649_v58 = vrot.slane %v383_v25, 2  ;;  %v697_v59 = vrot.slane %v415_v8, 4  ;;  %v279_v61 = vrot.slane %v196_v56, 5  ;;  %v170_v25 = vadd.f32 %v2369_v46, %v169_v23 }
 0x135   :  { %v315_v62 = vmax.f32 %v195_v41, %v279_v61  ;;  %v2509_v60 = vsel %vm467_vm4, %v649_v58, %v648_v19  ;;  %v2512_v0 = vsel %vm467_vm4, %v697_v59, %v696_v20  ;;  %v681_v41 = vld [vmem:[%s3668_s1 + $0x138] sm:$0xff] }
 0x136   :  { %v139_v2 = vpop.f32.mrf.mxu0  ;;  %720 = vmatpush.msrb.mxu3 %v681_v41 }
 0x137   :  { %v747_v4 = vrot.slane %v315_v62, 3  ;;  %v140_v5 = vadd.f32 %v2369_v46, %v139_v2  ;;  %v2607_v2 = vmax.f32 %v170_v25, 0.0 }
 0x138   :  { %721 = vmatpush.msrb.mxu3 %v680_v49 }
 0x139   :  { %v2516_v6 = vsel %vm467_vm4, %v747_v4, %v746_v24  ;;  %v197_v9 = vmax.f32 %v140_v5, 0.0  ;;  %v453_v24 = vld [vmem:[%s3668_s1 + $0x98] sm:$0xff] }
 0x13a   :  { %493 = vmatpush.msra.mxu1 %v453_v24  ;;  %722 = vmatpush.msrb.mxu3 %v679_v54 }
 0x13b   :  { %v280_v10 = vrot.slane %v197_v9, 5 }
 0x13c   :  { %494 = vmatpush.msra.mxu1 %v452_v26 }
 0x13d   :  { %v281_v11 = vsel %vm266_vm0, %v279_v61, %v280_v10  ;;  %v175_v61 = vpop.f32.mrf.mxu2 }
 0x13e   :  { %v316_v52 = vmax.f32 %v196_v56, %v281_v11  ;;  %v142_v53 = vpop.f32.mrf.mxu0  ;;  %495 = vmatpush.msra.mxu1 %v451_v28 }
 0x13f   :  { %v143_v14 = vadd.f32 %v2369_v46, %v142_v53 }
 0x140   :  { %v431_v55 = vrot.slane %v316_v52, 1  ;;  %621 = vmatpush.msrb.mxu1 %v593_v3 }
 0x141   :  { %v198_v45 = vmax.f32 %v143_v14, 0.0 }
 0x142   :  { %v447_v12 = vmax.f32 %v316_v52, %v431_v55  ;;  %622 = vmatpush.msrb.mxu1 %v592_v34  ;;  %v176_v52 = vadd.f32 %v2369_v46, %v175_v61 }
 0x143   :  { %v336_v56 = vrot.slane %v198_v45, 1  ;;  %v469_v22 = vrot.slane %v198_v45, 3 }
 0x144   :  { %v795_v13 = vrot.slane %v447_v12, 4  ;;  %v836_v15 = vrot.slane %v447_v12, 6  ;;  %v209_v26 = vmax.f32 %v176_v52, 0.0 }
 0x145   :  { %v352_v9 = vmax.f32 %v198_v45, %v336_v56  ;;  %v471_v14 = vsel %vm470_vm5, %v469_v22, %v2493_v36 }
 0x146   :  { %v145_v16 = vpop.f32.mrf.mxu0  ;;  %v2520_v17 = vsel %vm467_vm4, %v795_v13, %v794_v37  ;;  %v2523_v18 = vsel %vm467_vm4, %v836_v15, %v835_v38  ;;  %v591_v37 = vld [vmem:[%s3668_s1 + $0xf0] sm:$0xff]  ;;  %v633_v38 = vld [vmem:[%s3668_s1 + $0x120] sm:$0xff]  ;;  %v225_v13 = vrot.slane %v2607_v2, 5  ;;  %v2618_v15 = vadd.f32 %v2369_v46, %v172_v35 }
 0x147   :  { %623 = vmatpush.msrb.mxu1 %v591_v37  ;;  %670 = vmatpush.msra.mxu2 %v633_v38  ;;  %v146_v44 = vadd.f32 %v2369_v46, %v145_v16  ;;  %v520_v23 = vrot.slane %v352_v9, 4  ;;  %v561_v28 = vrot.slane %v352_v9, 6  ;;  %v289_v34 = vrot.slane %v209_v26, 5 }
 0x148   :  { %v249_v1 = vmax.f32 %v2607_v2, %v225_v13 }
 0x149   :  { %624 = vmatpush.msrb.mxu1 %v590_v40  ;;  %671 = vmatpush.msra.mxu2 %v632_v7  ;;  %v2602_v8 = vmax.f32 %v146_v44, 0.0  ;;  %v521_v37 = vsel %vm470_vm5, %v520_v23, %v2499_v42  ;;  %v562_v7 = vsel %vm470_vm5, %v561_v28, %v2502_v43 }
 0x14a   :  { %v402_v44 = vrot.slane %v249_v1, 1 }
 0x14b   :  { %672 = vmatpush.msra.mxu2 %v631_v48  ;;  %v223_v4 = vrot.slane %v2602_v8, 5 }
 0x14d   :  { %673 = vmatpush.msra.mxu2 %v630_v51  ;;  %v2620_v16 = vmax.f32 %v198_v45, %v223_v4 }
 0x14e   :  { %v2525_v19 = vpop.f32.mrf.mxu0 }
 0x14f   :  { %v149_v5 = vadd.f32 %v2369_v46, %v2525_v19  ;;  %v368_v63 = vrot.slane %v2620_v16, 1 }
 0x151   :  { %v200_v19 = vmax.f32 %v149_v5, 0.0  ;;  %v2643_v48 = vmax.f32 %v2620_v16, %v368_v63  ;;  %v2657_v5 = vmax.f32 %v249_v1, %v402_v44  ;;  %v829_v63 = vld [vmem:[%s3668_s1 + $0x1a0] sm:$0xff] }
 0x153   :  { %v2628_v3 = vrot.slane %v200_v19, 5 }
 0x156   :  { %v151_v20 = vpop.f32.mrf.mxu0 }
 0x157   :  { %v152_v59 = vadd.f32 %v2369_v46, %v151_v20  ;;  %v245_v20 = vmax.f32 %v2602_v8, %v223_v4  ;;  %v731_v4 = vld [vmem:[%s3668_s1 + $0x160] sm:$0xff] }
 0x159   :  { %v201_v53 = vmax.f32 %v152_v59, 0.0  ;;  %v400_v31 = vrot.slane %v245_v20, 1 }
 0x15b   :  { %v283_v27 = vrot.slane %v201_v53, 5  ;;  %v2645_v36 = vmax.f32 %v245_v20, %v400_v31 }
 0x15d   :  { %v284_v38 = vsel %vm266_vm0, %v2628_v3, %v283_v27  ;;  %v699_v53 = vrot.slane %v2645_v36, 3 }
 0x15e   :  { %v154_v21 = vpop.f32.mrf.mxu0  ;;  %v318_v51 = vmax.f32 %v200_v19, %v284_v38 }
 0x15f   :  { %v155_v62 = vadd.f32 %v2369_v46, %v154_v21 }
 0x160   :  { %v432_v20 = vrot.slane %v318_v51, 1 }
 0x161   :  { %v202_v12 = vmax.f32 %v155_v62, 0.0 }
 0x162   :  { %v448_v44 = vmax.f32 %v318_v51, %v432_v20  ;;  %v777_v51 = vld [vmem:[%s3668_s1 + $0x168] sm:$0xff]  ;;  %v871_v20 = vld [vmem:[%s3668_s1 + $0x1c0] sm:$0xff] }
 0x163   :  { %v337_v29 = vrot.slane %v202_v12, 1 }
 0x165   :  { %v353_v41 = vmax.f32 %v202_v12, %v337_v29 }
 0x166   :  { %v157_v30 = vpop.f32.mrf.mxu0 }
 0x167   :  { %v158_v58 = vadd.f32 %v2369_v46, %v157_v30  ;;  %v208_v30 = vmax.f32 %v2618_v15, 0.0  ;;  %v522_v61 = vrot.slane %v353_v41, 3  ;;  %v563_v62 = vrot.slane %v353_v41, 5  ;;  %v730_v15 = vld [vmem:[%s3668_s1 + $0x158] sm:$0xff]  ;;  %v778_v41 = vld [vmem:[%s3668_s1 + $0x170] sm:$0xff] }
 0x169   :  { %v2612_v10 = vmax.f32 %v158_v58, 0.0  ;;  %v2640_v45 = vrot.slane %v208_v30, 5  ;;  %v564_v26 = vsel %vm473_vm6, %v563_v62, %v562_v7 }
 0x16b   :  { %v224_v24 = vrot.slane %v2612_v10, 5 }
 0x16d   :  { %v247_v33 = vmax.f32 %v2612_v10, %v224_v24  ;;  %v246_v58 = vmax.f32 %v202_v12, %v224_v24  ;;  %v523_v24 = vsel %vm473_vm6, %v522_v61, %v521_v37  ;;  %v828_v37 = vld [vmem:[%s3668_s1 + $0x198] sm:$0xff] }
 0x16e   :  { %v160_v47 = vpop.f32.mrf.mxu0 }
 0x16f   :  { %v161_v21 = vadd.f32 %v2369_v46, %v160_v47  ;;  %v472_v47 = vrot.slane %v202_v12, 2  ;;  %v401_v54 = vrot.slane %v247_v33, 1  ;;  %v369_v23 = vrot.slane %v246_v58, 1 }
 0x170   :  { %v603_v27 = vrot.slane %v246_v58, 7 }
 0x171   :  { %v204_v32 = vmax.f32 %v161_v21, 0.0  ;;  %v474_v59 = vsel %vm473_vm6, %v472_v47, %v471_v14  ;;  %v417_v12 = vmax.f32 %v247_v33, %v401_v54  ;;  %v728_v33 = vld [vmem:[%s3668_s1 + $0x148] sm:$0xff]  ;;  %v602_v14 = vsel %vm470_vm5, %v2620_v16, %v2506_v57 }
 0x172   :  { %v604_v7 = vsel %vm473_vm6, %v603_v27, %v602_v14  ;;  %v700_v47 = vsel %vm470_vm5, %v699_v53, %v2512_v0  ;;  %v2087_v27 = vld [vmem:[%s3668_s1 + $0x81] ss:$0 sm:$0xff] }
 0x173   :  { %v2647_v42 = vrot.slane %v204_v32, 5  ;;  %v701_v31 = vrot.slane %v417_v12, 2 }
 0x176   :  { %v163_v11 = vpop.f32.mrf.mxu0 }
 0x177   :  { %v164_v55 = vadd.f32 %v2369_v46, %v163_v11 }
 0x179   :  { %v205_v50 = vmax.f32 %v164_v55, 0.0  ;;  %v317_v55 = vmax.f32 %v2602_v8, %v2628_v3  ;;  %v729_v8 = vld [vmem:[%s3668_s1 + $0x150] sm:$0xff]  ;;  %v319_v3 = vmax.f32 %v2612_v10, %v2647_v42  ;;  %v703_v10 = vrot.slane %v2657_v5, 1 }
 0x17b   :  { %v286_v39 = vrot.slane %v205_v50, 5  ;;  %v780_v50 = vld [vmem:[%s3668_s1 + $0x180] sm:$0xff]  ;;  %v749_v38 = vrot.slane %v317_v55, 2  ;;  %v751_v36 = vrot.slane %v319_v3, 1 }
 0x17c   :  { %v914_v3 = vld [vmem:[%s3669_s2 + $0x60] sm:$0xff] }
 0x17d   :  { %v287_v43 = vsel %vm266_vm0, %v2647_v42, %v286_v39  ;;  %v385_v39 = vmax.f32 %v246_v58, %v369_v23  ;;  %v750_v54 = vsel %vm470_vm5, %v749_v38, %v2516_v6  ;;  %v797_v58 = vrot.slane %v448_v44, 3  ;;  %v930_v23 = vld [vmem:[%s3669_s2 + $0xe0] sm:$0xff]  ;;  %v917_v38 = vld [vmem:[%s3669_s2 + $0x78] sm:$0xff] }
 0x17e   :  { %v166_v35 = vpop.f32.mrf.mxu0 }
 0x17f   :  { %v167_v40 = vadd.f32 %v2369_v46, %v166_v35  ;;  %v290_v46 = vsel %vm266_vm0, %v2640_v45, %v289_v34  ;;  %v779_v34 = vld [vmem:[%s3668_s1 + $0x178] sm:$0xff]  ;;  %v651_v35 = vrot.slane %v2643_v48, 1  ;;  %v827_v48 = vld [vmem:[%s3668_s1 + $0x190] sm:$0xff]  ;;  %v798_v5 = vsel %vm470_vm5, %v797_v58, %v2520_v17  ;;  %v875_v17 = vld [vmem:[%s3668_s1 + $0x1e0] sm:$0xff] }
 0x180   :  { %v322_v19 = vmax.f32 %v208_v30, %v290_v46  ;;  %v321_v46 = vmax.f32 %v2607_v2, %v2640_v45  ;;  %v752_v2 = vsel %vm473_vm6, %v751_v36, %v750_v54  ;;  %v919_v54 = vld [vmem:[%s3669_s2 + $0x88] sm:$0xff] }
 0x181   :  { %v206_v49 = vmax.f32 %v167_v40, 0.0  ;;  %v652_v0 = vsel %vm470_vm5, %v651_v35, %v2509_v60  ;;  %v910_v35 = vld [vmem:[%s3669_s2 + $0x40] sm:$0xff] }
 0x182   :  { %v434_v40 = vrot.slane %v322_v19, 1 }
 0x183   :  { %v248_v25 = vmax.f32 %v206_v49, %v225_v13  ;;  %v338_v56 = vrot.slane %v206_v49, 1  ;;  %v320_v13 = vmax.f32 %v204_v32, %v287_v43 }
 0x184   :  { %v450_v43 = vmax.f32 %v322_v19, %v434_v40  ;;  %v870_v19 = vld [vmem:[%s3668_s1 + $0x1b8] sm:$0xff]  ;;  %v906_v40 = vld [vmem:[%s3669_s2 + $0x20] sm:$0xff] }
 0x185   :  { %v354_v9 = vmax.f32 %v206_v49, %v338_v56  ;;  %v370_v11 = vrot.slane %v248_v25, 1  ;;  %v476_v52 = vsel %vm475_vm7, %v338_v56, %v474_v59  ;;  %v605_v30 = vrot.slane %v248_v25, 6  ;;  %v826_v56 = vld [vmem:[%s3668_s1 + $0x188] sm:$0xff] }
 0x186   :  { %2028 = vmatmul.msk.f32.vlgmr.msra.gmra.mxu1 %vm477_vm8, %v476_v52  ;;  %v433_v32 = vrot.slane %v320_v13, 1  ;;  %v702_v49 = vsel %vm473_vm6, %v701_v31, %v700_v47  ;;  %v838_v59 = vrot.slane %v448_v44, 5  ;;  %v801_v45 = vrot.slane %v450_v43, 1  ;;  %v925_v31 = vld [vmem:[%s3669_s2 + $0xb8] sm:$0xff]  ;;  %v931_v47 = vld [vmem:[%s3669_s2 + $0xe8] sm:$0xff] }
 0x187   :  { %v524_v21 = vrot.slane %v354_v9, 2  ;;  %v565_v22 = vrot.slane %v354_v9, 4  ;;  %768 = vmatpush.msra.mxu1 %v731_v4  ;;  %v386_v28 = vmax.f32 %v248_v25, %v370_v11  ;;  %v606_v57 = vsel %vm475_vm7, %v605_v30, %v604_v7  ;;  %v929_v30 = vld [vmem:[%s3669_s2 + $0xd8] sm:$0xff]  ;;  %v912_v7 = vld [vmem:[%s3669_s2 + $0x50] sm:$0xff] }
 0x188   :  { %v449_v42 = vmax.f32 %v320_v13, %v433_v32  ;;  %v653_v25 = vsel %vm473_vm6, %v385_v39, %v652_v0  ;;  %v704_v60 = vsel %vm475_vm7, %v703_v10, %v702_v49  ;;  %v753_v4 = vsel %vm475_vm7, %v321_v46, %v752_v2  ;;  %v873_v13 = vld [vmem:[%s3668_s1 + $0x1d0] sm:$0xff]  ;;  %v907_v2 = vld [vmem:[%s3669_s2 + $0x28] sm:$0xff] }
 0x189   :  { %v525_v29 = vsel %vm475_vm7, %v524_v21, %v523_v24  ;;  %v566_v1 = vsel %vm475_vm7, %v565_v22, %v564_v26  ;;  %769 = vmatpush.msra.mxu1 %v730_v15  ;;  %v654_v16 = vrot.slane %v386_v28, 7  ;;  %v839_v9 = vsel %vm470_vm5, %v838_v59, %v2523_v18  ;;  %v874_v18 = vld [vmem:[%s3668_s1 + $0x1d8] sm:$0xff]  ;;  %v872_v15 = vld [vmem:[%s3668_s1 + $0x1c8] sm:$0xff]  ;;  %v869_v21 = vld [vmem:[%s3668_s1 + $0x1b0] sm:$0xff] }
 0x18a   :  { %2029 = vmatmul.msk.f32.vlgmr.msrb.gmra.mxu2 %vm477_vm8, %v525_v29  ;;  %2030 = vmatmul.msk.f32.vlgmr.msra.gmra.mxu3 %vm477_vm8, %v566_v1  ;;  %v799_v62 = vrot.slane %v449_v42, 2  ;;  %v840_v6 = vrot.slane %v449_v42, 4  ;;  %v842_v11 = vrot.slane %v450_v43, 3  ;;  %v868_v22 = vld [vmem:[%s3668_s1 + $0x1a8] sm:$0xff]  ;;  %v926_v24 = vld [vmem:[%s3669_s2 + $0xc0] sm:$0xff]  ;;  %v933_v28 = vld [vmem:[%s3669_s2 + $0xf8] sm:$0xff] }
 0x18b   :  { %770 = vmatpush.msra.mxu1 %v729_v8  ;;  %817 = vmatpush.msrb.mxu2 %v780_v50  ;;  %v655_v61 = vsel %vm475_vm7, %v654_v16, %v653_v25  ;;  %v922_v26 = vld [vmem:[%s3669_s2 + $0xa0] sm:$0xff]  ;;  %v932_v50 = vld [vmem:[%s3669_s2 + $0xf0] sm:$0xff]  ;;  %v915_v43 = vld [vmem:[%s3669_s2 + $0x68] sm:$0xff] }
 0x18c   :  { %858 = vmatpush.msra.mxu3 %v829_v63  ;;  %v800_v52 = vsel %vm473_vm6, %v799_v62, %v798_v5  ;;  %v841_v53 = vsel %vm473_vm6, %v840_v6, %v839_v9  ;;  %v918_v29 = vld [vmem:[%s3669_s2 + $0x80] sm:$0xff]  ;;  %v928_v1 = vld [vmem:[%s3669_s2 + $0xd0] sm:$0xff]  ;;  %v903_v5 = vld [vmem:[%s3669_s2 + $0x8] sm:$0xff] }
 0x18d   :  { %771 = vmatpush.msra.mxu1 %v728_v33  ;;  %818 = vmatpush.msrb.mxu2 %v779_v34  ;;  %v802_v55 = vsel %vm475_vm7, %v801_v45, %v800_v52  ;;  %v843_v12 = vsel %vm475_vm7, %v842_v11, %v841_v53  ;;  %v924_v63 = vld [vmem:[%s3669_s2 + $0xb0] sm:$0xff]  ;;  %v921_v33 = vld [vmem:[%s3669_s2 + $0x98] sm:$0xff]  ;;  %v2867_v52 = vld [vmem:[%s3669_s2 + $0x2e8] sm:$0xff] }
 0x18e   :  { %2031 = vmatmul.msk.f32.vlgmr.msrb.gmra.mxu1 %vm477_vm8, %v606_v57  ;;  %859 = vmatpush.msra.mxu3 %v828_v37  ;;  %v920_v32 = vld [vmem:[%s3669_s2 + $0x90] sm:$0xff]  ;;  %v902_v57 = vld [vmem:[%s3669_s2] sm:$0xff]  ;;  %v905_v11 = vld [vmem:[%s3669_s2 + $0x18] sm:$0xff]  ;;  %3711 = vst [vmem:[#allocation5_spill] sm:$0xff] %v2867_v52 }
 0x18f   :  { %819 = vmatpush.msrb.mxu2 %v778_v41  ;;  %890 = vmatpush.msrb.mxu1 %v875_v17  ;;  %v916_v37 = vld [vmem:[%s3669_s2 + $0x70] sm:$0xff]  ;;  %v913_v41 = vld [vmem:[%s3669_s2 + $0x58] sm:$0xff]  ;;  %v2873_v53 = vld [vmem:[%s3669_s2 + $0x2c8] sm:$0xff] }
 0x190   :  { %860 = vmatpush.msra.mxu3 %v827_v48  ;;  %v927_v48 = vld [vmem:[%s3669_s2 + $0xc8] sm:$0xff]  ;;  %v908_v45 = vld [vmem:[%s3669_s2 + $0x30] sm:$0xff]  ;;  %3712 = vst [vmem:[#allocation6_spill] sm:$0xff] %v2873_v53 }
 0x191   :  { %820 = vmatpush.msrb.mxu2 %v777_v51  ;;  %891 = vmatpush.msrb.mxu1 %v874_v18  ;;  %v923_v51 = vld [vmem:[%s3669_s2 + $0xa8] sm:$0xff]  ;;  %v904_v9 = vld [vmem:[%s3669_s2 + $0x10] sm:$0xff] }
 0x192   :  { %2032 = vmatmul.msk.f32.vlgmr.msra.gmra.mxu2 %vm477_vm8, %v655_v61  ;;  %2033 = vmatmul.msk.f32.vlgmr.msrb.gmra.mxu3 %vm477_vm8, %v704_v60  ;;  %v2891_v17 = vld [vmem:[%s3669_s2 + $0x268] sm:$0xff] }
 0x193   :  { %861 = vmatpush.msra.mxu3 %v826_v56  ;;  %892 = vmatpush.msrb.mxu1 %v873_v13  ;;  %v911_v56 = vld [vmem:[%s3669_s2 + $0x48] sm:$0xff]  ;;  %3715 = vst [vmem:[#allocation9_spill] sm:$0xff] %v2891_v17 }
 0x194   :  { %1016 = vmatpush.msra.mxu2 %v933_v28  ;;  %v2897_v18 = vld [vmem:[%s3669_s2 + $0x248] sm:$0xff]  ;;  %v2961_v28 = vld [vmem:[%s3669_s2 + $0x2c0] sm:$0xff] }
 0x195   :  { %893 = vmatpush.msrb.mxu1 %v872_v15  ;;  %956 = vmatpush.msrb.mxu3 %v930_v23  ;;  %3716 = vst [vmem:[#allocation10_spill] sm:$0xff] %v2897_v18  ;;  %v2903_v13 = vld [vmem:[%s3669_s2 + $0x228] sm:$0xff] }
 0x196   :  { %2034 = vmatmul.msk.f32.vlgmr.msra.gmra.mxu1 %vm477_vm8, %v753_v4  ;;  %1017 = vmatpush.msra.mxu2 %v929_v30  ;;  %v909_v4 = vld [vmem:[%s3669_s2 + $0x38] sm:$0xff]  ;;  %3717 = vst [vmem:[#allocation11_spill] sm:$0xff] %v2903_v13  ;;  %v2909_v15 = vld [vmem:[%s3669_s2 + $0x208] sm:$0xff]  ;;  %v2978_v30 = vld [vmem:[%s3669_s2 + $0x2a0] sm:$0xff] }
 0x197   :  { %894 = vmatpush.msrb.mxu1 %v871_v20  ;;  %957 = vmatpush.msrb.mxu3 %v926_v24  ;;  %3718 = vst [vmem:[#allocation12_spill] sm:$0xff] %v2909_v15  ;;  %v2915_v20 = vld [vmem:[%s3669_s2 + $0x1e8] sm:$0xff] }
 0x198   :  { %1018 = vmatpush.msra.mxu2 %v925_v31  ;;  %3719 = vst [vmem:[#allocation13_spill] sm:$0xff] %v2915_v20  ;;  %v2936_v23 = vld [vmem:[%s3669_s2 + $0x188] sm:$0xff]  ;;  %v2991_v31 = vld [vmem:[%s3669_s2 + $0x2d0] sm:$0xff] }
 0x199   :  { %895 = vmatpush.msrb.mxu1 %v870_v19  ;;  %958 = vmatpush.msrb.mxu3 %v922_v26  ;;  %v2921_v19 = vld [vmem:[%s3669_s2 + $0x1c8] sm:$0xff]  ;;  %3722 = vst [vmem:[#allocation16_spill] sm:$0xff] %v2936_v23 }
 0x19a   :  { %2035 = vmatmul.msk.f32.vlgmr.msrb.gmra.mxu2 %vm477_vm8, %v802_v55  ;;  %2036 = vmatmul.msk.f32.vlgmr.msra.gmra.mxu3 %vm477_vm8, %v843_v12  ;;  %v2879_v55 = vld [vmem:[%s3669_s2 + $0x2a8] sm:$0xff]  ;;  %3720 = vst [vmem:[#allocation14_spill] sm:$0xff] %v2921_v19 }
 0x19b   :  { %896 = vmatpush.msrb.mxu1 %v869_v21  ;;  %959 = vmatpush.msrb.mxu3 %v918_v29  ;;  %3713 = vst [vmem:[#allocation7_spill] sm:$0xff] %v2879_v55  ;;  %v2885_v12 = vld [vmem:[%s3669_s2 + $0x288] sm:$0xff] }
 0x19c   :  { %1019 = vmatpush.msra.mxu2 %v921_v33  ;;  %3714 = vst [vmem:[#allocation8_spill] sm:$0xff] %v2885_v12  ;;  %v2927_v21 = vld [vmem:[%s3669_s2 + $0x1a8] sm:$0xff]  ;;  %v3010_v33 = vld [vmem:[%s3669_s2 + $0x260] sm:$0xff] }
 0x19d   :  { %897 = vmatpush.msrb.mxu1 %v868_v22  ;;  %960 = vmatpush.msrb.mxu3 %v914_v3  ;;  %3721 = vst [vmem:[#allocation15_spill] sm:$0xff] %v2927_v21  ;;  %v2088_v22 = vld [vmem:[%s3668_s1 + $0x82] ss:$0 sm:$0xff]  ;;  %v2942_v24 = vld [vmem:[%s3669_s2 + $0x168] sm:$0xff] }
 0x19e   :  { %1020 = vmatpush.msra.mxu2 %v917_v38  ;;  %3723 = vst [vmem:[#allocation17_spill] sm:$0xff] %v2942_v24  ;;  %v2968_v29 = vld [vmem:[%s3669_s2 + $0x128] sm:$0xff]  ;;  %v2996_v3 = vld [vmem:[%s3669_s2 + $0x280] sm:$0xff]  ;;  %v3045_v38 = vld [vmem:[%s3669_s2 + $0x250] sm:$0xff] }
 0x19f   :  { %996 = vmatpush.msra.mxu1 %v932_v50  ;;  %961 = vmatpush.msrb.mxu3 %v910_v35  ;;  %v2953_v50 = vld [vmem:[%s3669_s2 + $0x148] sm:$0xff]  ;;  %3725 = vst [vmem:[#allocation19_spill] sm:$0xff] %v2968_v29  ;;  %v3024_v35 = vld [vmem:[%s3669_s2 + $0x240] sm:$0xff] }
 0x1a0   :  { %1021 = vmatpush.msra.mxu2 %v913_v41  ;;  %3724 = vst [vmem:[#allocation18_spill] sm:$0xff] %v2953_v50  ;;  %v3071_v41 = vld [vmem:[%s3669_s2 + $0x210] sm:$0xff] }
 0x1a1   :  { %997 = vmatpush.msra.mxu1 %v928_v1  ;;  %962 = vmatpush.msrb.mxu3 %v906_v40  ;;  %v2973_v1 = vld [vmem:[%s3669_s2 + $0x2f0] sm:$0xff] }
 0x1a2   :  { %1022 = vmatpush.msra.mxu2 %v909_v4  ;;  %v3058_v40 = vld [vmem:[%s3669_s2 + $0x230] sm:$0xff]  ;;  %v3227_v4 = vld [vmem:[%s3669_s2 + $0x238] sm:$0xff] }
 0x1a3   :  { %998 = vmatpush.msra.mxu1 %v924_v63  ;;  %963 = vmatpush.msrb.mxu3 %v902_v57  ;;  %v2986_v63 = vld [vmem:[%s3669_s2 + $0x108] sm:$0xff]  ;;  %v3084_v57 = vld [vmem:[%s3669_s2 + $0x1f0] sm:$0xff] }
 0x1a4   :  { %1023 = vmatpush.msra.mxu2 %v905_v11  ;;  %3726 = vst [vmem:[#allocation20_spill] sm:$0xff] %v2986_v63  ;;  %v3251_v11 = vld [vmem:[%s3669_s2 + $0x1d8] sm:$0xff] }
 0x1a5   :  { %999 = vmatpush.msra.mxu1 %v920_v32  ;;  %976 = vmatpush.msra.mxu3 %v931_v47  ;;  %v3004_v32 = vld [vmem:[%s3669_s2 + $0x2b0] sm:$0xff]  ;;  %3733 = vst [vmem:[#allocation27_spill] sm:$0xff] %v3251_v11 }
 0x1a6   :  { %1150 = vmatpush.msrb.mxu2 %v2973_v1  ;;  %v3097_v47 = vld [vmem:[%s3669_s2 + $0x1d0] sm:$0xff] }
 0x1a7   :  { %1000 = vmatpush.msra.mxu1 %v916_v37  ;;  %977 = vmatpush.msra.mxu3 %v927_v48  ;;  %v3037_v37 = vld [vmem:[%s3669_s2 + $0x220] sm:$0xff] }
 0x1a8   :  { %1151 = vmatpush.msrb.mxu2 %v2991_v31  ;;  %v3102_v48 = vld [vmem:[%s3669_s2 + $0x180] sm:$0xff] }
 0x1a9   :  { %1001 = vmatpush.msra.mxu1 %v912_v7  ;;  %978 = vmatpush.msra.mxu3 %v923_v51  ;;  %v3063_v7 = vld [vmem:[%s3669_s2 + $0x1e0] sm:$0xff] }
 0x1aa   :  { %1152 = vmatpush.msrb.mxu2 %v3004_v32  ;;  %v3128_v51 = vld [vmem:[%s3669_s2 + $0x140] sm:$0xff] }
 0x1ab   :  { %979 = vmatpush.msra.mxu3 %v919_v54  ;;  %1002 = vmatpush.msra.mxu1 %v908_v45  ;;  %3727 = vst [vmem:[#allocation21_spill] sm:$0xff] %v3128_v51  ;;  %v3141_v54 = vld [vmem:[%s3669_s2 + $0x120] sm:$0xff]  ;;  %v3219_v45 = vld [vmem:[%s3669_s2 + $0x258] sm:$0xff] }
 0x1ac   :  { %3728 = vst [vmem:[#allocation22_spill] sm:$0xff] %v3141_v54 }
 0x1ad   :  { %980 = vmatpush.msra.mxu3 %v915_v43  ;;  %1003 = vmatpush.msra.mxu1 %v904_v9  ;;  %v3154_v43 = vld [vmem:[%s3669_s2 + $0x100] sm:$0xff]  ;;  %v3243_v9 = vld [vmem:[%s3669_s2 + $0x1f8] sm:$0xff] }
 0x1ae   :  { %3729 = vst [vmem:[#allocation23_spill] sm:$0xff] %v3154_v43 }
 0x1af   :  { %981 = vmatpush.msra.mxu3 %v911_v56  ;;  %v3167_v56 = vld [vmem:[%s3669_s2 + $0x2f8] sm:$0xff]  ;;  %3732 = vst [vmem:[#allocation26_spill] sm:$0xff] %v3243_v9 }
 0x1b1   :  { %982 = vmatpush.msra.mxu3 %v907_v2  ;;  %v3210_v2 = vld [vmem:[%s3669_s2 + $0x278] sm:$0xff] }
 0x1b3   :  { %983 = vmatpush.msra.mxu3 %v903_v5  ;;  %v3235_v5 = vld [vmem:[%s3669_s2 + $0x218] sm:$0xff] }
 0x203   :  { %v497_v8 = vpop.f32.mrf.mxu1 }
 0x204   :  { %v498_v34 = vadd.f32 %v2087_v27, %v497_v8  ;;  %v2948_v8 = vld [vmem:[%s3669_s2 + $0x2e0] sm:$0xff] }
 0x20b   :  { %v626_v16 = vpop.f32.mrf.mxu1 }
 0x20d   :  { %v545_v14 = vpop.f32.mrf.mxu2  ;;  %v586_v10 = vpop.f32.mrf.mxu3 }
 0x20e   :  { %v548_v39 = vadd.f32 %v545_v14, %v498_v34  ;;  %v3017_v34 = vld [vmem:[%s3669_s2 + $0x290] sm:$0xff]  ;;  %v3671_v14 = vmov 0.0  }
 0x20f   :  { %1153 = vmatpush.msrb.mxu2 %v3017_v34 }
 0x210   :  { %v589_v44 = vadd.f32 %v586_v10, %v548_v39  ;;  %v3032_v10 = vld [vmem:[%s3669_s2 + $0x270] sm:$0xff]  ;;  %v3050_v39 = vld [vmem:[%s3669_s2 + $0x200] sm:$0xff] }
 0x211   :  { %1154 = vmatpush.msrb.mxu2 %v3032_v10 }
 0x212   :  { %v629_v36 = vadd.f32 %v626_v16, %v589_v44  ;;  %v3076_v44 = vld [vmem:[%s3669_s2 + $0x1c0] sm:$0xff] }
 0x213   :  { %v773_v25 = vpop.f32.mrf.mxu1  ;;  %1155 = vmatpush.msrb.mxu2 %v3045_v38  ;;  %v3089_v16 = vld [vmem:[%s3669_s2 + $0x1a0] sm:$0xff] }
 0x215   :  { %v675_v42 = vpop.f32.mrf.mxu2  ;;  %v724_v49 = vpop.f32.mrf.mxu3  ;;  %1156 = vmatpush.msrb.mxu2 %v3058_v40 }
 0x216   :  { %v678_v0 = vadd.f32 %v675_v42, %v629_v36  ;;  %v3110_v36 = vld [vmem:[%s3669_s2 + $0x1b0] sm:$0xff]  ;;  %v3115_v42 = vld [vmem:[%s3669_s2 + $0x160] sm:$0xff] }
 0x217   :  { %1157 = vmatpush.msrb.mxu2 %v3071_v41 }
 0x218   :  { %v727_v46 = vadd.f32 %v724_v49, %v678_v0  ;;  %v3123_v49 = vld [vmem:[%s3669_s2 + $0x190] sm:$0xff] }
 0x219   :  { %1158 = vmatpush.msrb.mxu2 %v3084_v57  ;;  %v3136_v0 = vld [vmem:[%s3669_s2 + $0x170] sm:$0xff] }
 0x21a   :  { %v776_v58 = vadd.f32 %v773_v25, %v727_v46  ;;  %v3149_v46 = vld [vmem:[%s3669_s2 + $0x150] sm:$0xff] }
 0x21b   :  { %1159 = vmatpush.msrb.mxu2 %v3097_v47  ;;  %v3162_v25 = vld [vmem:[%s3669_s2 + $0x130] sm:$0xff] }
 0x21c   :  { %3730 = vst [vmem:[#allocation24_spill] sm:$0xff] %v3162_v25 }
 0x21d   :  { %v822_v59 = vpop.f32.mrf.mxu2  ;;  %v863_v60 = vpop.f32.mrf.mxu3  ;;  %1160 = vmatpush.msrb.mxu2 %v3110_v36 }
 0x21e   :  { %v825_v61 = vadd.f32 %v822_v59, %v776_v58  ;;  %v3176_v58 = vld [vmem:[%s3669_s2 + $0x2d8] sm:$0xff]  ;;  %v3181_v59 = vld [vmem:[%s3669_s2 + $0x110] sm:$0xff] }
 0x21f   :  { %1161 = vmatpush.msrb.mxu2 %v3123_v49  ;;  %3731 = vst [vmem:[#allocation25_spill] sm:$0xff] %v3181_v59 }
 0x220   :  { %v866_v62 = vadd.f32 %v863_v60, %v825_v61  ;;  %v3186_v61 = vld [vmem:[%s3667_s0 + $0x100] sm:$0x3]  ;;  %v3194_v60 = vld [vmem:[%s3669_s2 + $0x2b8] sm:$0xff] }
 0x221   :  { %1162 = vmatpush.msrb.mxu2 %v3136_v0 }
 0x222   :  { %v867_v6 = vmax.f32 %v866_v62, 0.0  ;;  %v2221_v62 = vmov 0  }
 0x223   :  { %1163 = vmatpush.msrb.mxu2 %v3149_v46  ;;  %2081 = vset.pattern.permute.xlu0 %v2221_v62  ;;  %v3283_v62 = vld [vmem:[%s3669_s2 + $0x158] sm:$0xff] }
 0x224   :  { %2037 = vmatmul.msk.f32.vlgmr.msrb.gmra.mxu1 %vm878_vm9, %v867_v6  ;;  %1310 = vperm.xlu0 %2081, %v3186_v61   ;;  %v3202_v6 = vld [vmem:[%s3669_s2 + $0x298] sm:$0xff] }
 0x225   :  { %1130 = vmatpush.msrb.mxu1 %v2867_v52  ;;  %1164 = vmatpush.msrb.mxu2 %v3162_v25 }
 0x227   :  { %1131 = vmatpush.msrb.mxu1 %v2873_v53  ;;  %1165 = vmatpush.msrb.mxu2 %v3181_v59 }
 0x229   :  { %1132 = vmatpush.msrb.mxu1 %v2879_v55 }
 0x22b   :  { %1133 = vmatpush.msrb.mxu1 %v2885_v12 }
 0x22d   :  { %1134 = vmatpush.msrb.mxu1 %v2891_v17 }
 0x22f   :  { %1135 = vmatpush.msrb.mxu1 %v2897_v18 }
 0x231   :  { %1136 = vmatpush.msrb.mxu1 %v2903_v13 }
 0x233   :  { %1137 = vmatpush.msrb.mxu1 %v2909_v15 }
 0x235   :  { %1138 = vmatpush.msrb.mxu1 %v2915_v20 }
 0x237   :  { %1139 = vmatpush.msrb.mxu1 %v2921_v19 }
 0x239   :  { %1140 = vmatpush.msrb.mxu1 %v2927_v21 }
 0x23b   :  { %1141 = vmatpush.msrb.mxu1 %v2936_v23 }
 0x23d   :  { %1142 = vmatpush.msrb.mxu1 %v2942_v24 }
 0x23f   :  { %1143 = vmatpush.msrb.mxu1 %v2953_v50 }
 0x241   :  { %1144 = vmatpush.msrb.mxu1 %v2968_v29 }
 0x243   :  { %1145 = vmatpush.msrb.mxu1 %v2986_v63 }
 0x2a1   :  { %v899_v26 = vpop.f32.mrf.mxu1 }
 0x2a2   :  { %v900_v27 = vadd.f32 %v2088_v22, %v899_v26  ;;  %v3259_v22 = vld [vmem:[%s3669_s2 + $0x1b8] sm:$0xff] }
 0x2a3   :  { %v3267_v26 = vld [vmem:[%s3669_s2 + $0x198] sm:$0xff] }
 0x2a4   :  { %2039 = vmatmul.msk.f32.vlgmr.msrb.gmra.mxu3 %vm878_vm9, %v900_v27  ;;  %2041 = vmatmul.msk.f32.vlgmr.msra.gmra.mxu1 %vm878_vm9, %v900_v27 }
 0x2a5   :  { %2042 = vmatmul.msk.f32.vlgmr.msra.gmra.mxu2 %vm878_vm9, %v900_v27  ;;  %1110 = vmatpush.msrb.mxu3 %v2948_v8 }
 0x2a6   :  { %1321 = vmatpush.msra.mxu1 %v2948_v8  ;;  %1341 = vmatpush.msra.mxu2 %v2867_v52 }
 0x2a7   :  { %1111 = vmatpush.msrb.mxu3 %v2961_v28 }
 0x2a8   :  { %1322 = vmatpush.msra.mxu1 %v2961_v28  ;;  %1342 = vmatpush.msra.mxu2 %v2873_v53 }
 0x2a9   :  { %1112 = vmatpush.msrb.mxu3 %v2978_v30 }
 0x2aa   :  { %1323 = vmatpush.msra.mxu1 %v2978_v30  ;;  %1343 = vmatpush.msra.mxu2 %v2879_v55 }
 0x2ab   :  { %1113 = vmatpush.msrb.mxu3 %v2996_v3 }
 0x2ac   :  { %2040 = vmatmul.msk.f32.vlgmr.msra.gmra.mxu3 %vm878_vm9, %v900_v27  ;;  %1146 = vmatmul.f32.vlgmr.msrb.gmra.mxu1 %v3671_v14  ;;  %v3275_v27 = vld [vmem:[%s3669_s2 + $0x178] sm:$0xff] }
 0x2ad   :  { %1114 = vmatpush.msrb.mxu3 %v3010_v33  ;;  %1324 = vmatpush.msra.mxu1 %v2996_v3 }
 0x2ae   :  { %1166 = vmatmul.f32.vlgmr.msrb.gmra.mxu2 %v3671_v14 }
 0x2af   :  { %1115 = vmatpush.msrb.mxu3 %v3024_v35  ;;  %1325 = vmatpush.msra.mxu1 %v3010_v33 }
 0x2b0   :  { %1344 = vmatpush.msra.mxu2 %v2885_v12 }
 0x2b1   :  { %1116 = vmatpush.msrb.mxu3 %v3037_v37  ;;  %1326 = vmatpush.msra.mxu1 %v3024_v35 }
 0x2b2   :  { %1345 = vmatpush.msra.mxu2 %v2891_v17 }
 0x2b3   :  { %1117 = vmatpush.msrb.mxu3 %v3050_v39  ;;  %1327 = vmatpush.msra.mxu1 %v3037_v37 }
 0x2b4   :  { %1346 = vmatpush.msra.mxu2 %v2897_v18 }
 0x2b5   :  { %1118 = vmatpush.msrb.mxu3 %v3063_v7  ;;  %1328 = vmatpush.msra.mxu1 %v3050_v39 }
 0x2b6   :  { %1347 = vmatpush.msra.mxu2 %v2903_v13 }
 0x2b7   :  { %1119 = vmatpush.msrb.mxu3 %v3076_v44  ;;  %1329 = vmatpush.msra.mxu1 %v3063_v7 }
 0x2b8   :  { %1348 = vmatpush.msra.mxu2 %v2909_v15 }
 0x2b9   :  { %1120 = vmatpush.msrb.mxu3 %v3089_v16  ;;  %1330 = vmatpush.msra.mxu1 %v3076_v44 }
 0x2ba   :  { %1349 = vmatpush.msra.mxu2 %v2915_v20 }
 0x2bb   :  { %1121 = vmatpush.msrb.mxu3 %v3102_v48  ;;  %1331 = vmatpush.msra.mxu1 %v3089_v16 }
 0x2bc   :  { %1350 = vmatpush.msra.mxu2 %v2921_v19 }
 0x2bd   :  { %1122 = vmatpush.msrb.mxu3 %v3115_v42  ;;  %1332 = vmatpush.msra.mxu1 %v3102_v48 }
 0x2be   :  { %1351 = vmatpush.msra.mxu2 %v2927_v21 }
 0x2bf   :  { %1123 = vmatpush.msrb.mxu3 %v3128_v51  ;;  %1333 = vmatpush.msra.mxu1 %v3115_v42 }
 0x2c0   :  { %1352 = vmatpush.msra.mxu2 %v2936_v23 }
 0x2c1   :  { %1124 = vmatpush.msrb.mxu3 %v3141_v54  ;;  %1334 = vmatpush.msra.mxu1 %v3128_v51 }
 0x2c2   :  { %1353 = vmatpush.msra.mxu2 %v2942_v24 }
 0x2c3   :  { %1125 = vmatpush.msrb.mxu3 %v3154_v43  ;;  %1335 = vmatpush.msra.mxu1 %v3141_v54 }
 0x2c4   :  { %1126 = vmatmul.f32.vlgmr.msrb.gmra.mxu3 %v3671_v14  ;;  %v3291_v14 = vld [vmem:[%s3669_s2 + $0x138] sm:$0xff]  ;;  %1354 = vmatpush.msra.mxu2 %v2953_v50 }
 0x2c5   :  { %1170 = vmatpush.msra.mxu3 %v3167_v56  ;;  %1336 = vmatpush.msra.mxu1 %v3154_v43  ;;  %3734 = vst [vmem:[#allocation28_spill] sm:$0xff] %v3291_v14 }
 0x2c6   :  { %1355 = vmatpush.msra.mxu2 %v2968_v29 }
 0x2c7   :  { %1171 = vmatpush.msra.mxu3 %v3176_v58  ;;  %1381 = vmatpush.msrb.mxu1 %v3167_v56 }
 0x2c8   :  { %1356 = vmatpush.msra.mxu2 %v2986_v63 }
 0x2c9   :  { %1172 = vmatpush.msra.mxu3 %v3194_v60  ;;  %1382 = vmatpush.msrb.mxu1 %v3176_v58 }
 0x2ca   :  { %1537 = vmatpush.msrb.mxu2 %v2948_v8 }
 0x2cb   :  { %1173 = vmatpush.msra.mxu3 %v3202_v6  ;;  %1383 = vmatpush.msrb.mxu1 %v3194_v60 }
 0x2cc   :  { %1538 = vmatpush.msrb.mxu2 %v2961_v28 }
 0x2cd   :  { %1174 = vmatpush.msra.mxu3 %v3210_v2  ;;  %1384 = vmatpush.msrb.mxu1 %v3202_v6 }
 0x2ce   :  { %1539 = vmatpush.msrb.mxu2 %v2978_v30 }
 0x2cf   :  { %1175 = vmatpush.msra.mxu3 %v3219_v45  ;;  %1385 = vmatpush.msrb.mxu1 %v3210_v2 }
 0x2d0   :  { %1540 = vmatpush.msrb.mxu2 %v2996_v3 }
 0x2d1   :  { %1176 = vmatpush.msra.mxu3 %v3227_v4  ;;  %1386 = vmatpush.msrb.mxu1 %v3219_v45 }
 0x2d2   :  { %1541 = vmatpush.msrb.mxu2 %v3010_v33 }
 0x2d3   :  { %1177 = vmatpush.msra.mxu3 %v3235_v5  ;;  %1387 = vmatpush.msrb.mxu1 %v3227_v4 }
 0x2d4   :  { %1542 = vmatpush.msrb.mxu2 %v3024_v35 }
 0x2d5   :  { %1178 = vmatpush.msra.mxu3 %v3243_v9  ;;  %1388 = vmatpush.msrb.mxu1 %v3235_v5 }
 0x2d6   :  { %1543 = vmatpush.msrb.mxu2 %v3037_v37 }
 0x2d7   :  { %1179 = vmatpush.msra.mxu3 %v3251_v11  ;;  %1389 = vmatpush.msrb.mxu1 %v3243_v9  ;;  %v3299_v9 = vld [vmem:[%s3669_s2 + $0x118] sm:$0xff] }
 0x2d8   :  { %3735 = vst [vmem:[#allocation29_spill] sm:$0xff] %v3299_v9  ;;  %1544 = vmatpush.msrb.mxu2 %v3050_v39 }
 0x2d9   :  { %1180 = vmatpush.msra.mxu3 %v3259_v22  ;;  %1390 = vmatpush.msrb.mxu1 %v3251_v11  ;;  %v3736_v11 = vmov 0.0  }
 0x2da   :  { %1545 = vmatpush.msrb.mxu2 %v3063_v7 }
 0x2db   :  { %1181 = vmatpush.msra.mxu3 %v3267_v26  ;;  %1391 = vmatpush.msrb.mxu1 %v3259_v22 }
 0x2dc   :  { %1546 = vmatpush.msrb.mxu2 %v3076_v44 }
 0x2dd   :  { %1182 = vmatpush.msra.mxu3 %v3275_v27  ;;  %1392 = vmatpush.msrb.mxu1 %v3267_v26 }
 0x2de   :  { %1547 = vmatpush.msrb.mxu2 %v3089_v16 }
 0x2df   :  { %1183 = vmatpush.msra.mxu3 %v3283_v62  ;;  %1393 = vmatpush.msrb.mxu1 %v3275_v27 }
 0x2e0   :  { %1548 = vmatpush.msrb.mxu2 %v3102_v48 }
 0x2e1   :  { %1184 = vmatpush.msra.mxu3 %v3291_v14  ;;  %1394 = vmatpush.msrb.mxu1 %v3283_v62 }
 0x2e2   :  { %1549 = vmatpush.msrb.mxu2 %v3115_v42 }
 0x2e3   :  { %1185 = vmatpush.msra.mxu3 %v3299_v9  ;;  %1395 = vmatpush.msrb.mxu1 %v3291_v14 }
 0x2e4   :  { %1186 = vmatmul.f32.vlgmr.msra.gmra.mxu3 %v3736_v11  ;;  %1550 = vmatpush.msrb.mxu2 %v3128_v51 }
 0x2e5   :  { %1361 = vmatpush.msrb.mxu3 %v2973_v1  ;;  %1396 = vmatpush.msrb.mxu1 %v3299_v9 }
 0x2e6   :  { %1551 = vmatpush.msrb.mxu2 %v3141_v54 }
 0x2e7   :  { %1362 = vmatpush.msrb.mxu3 %v2991_v31 }
 0x2e8   :  { %1552 = vmatpush.msrb.mxu2 %v3154_v43 }
 0x2e9   :  { %1363 = vmatpush.msrb.mxu3 %v3004_v32 }
 0x2eb   :  { %1364 = vmatpush.msrb.mxu3 %v3017_v34 }
 0x2ed   :  { %1365 = vmatpush.msrb.mxu3 %v3032_v10 }
 0x2ef   :  { %1366 = vmatpush.msrb.mxu3 %v3045_v38 }
 0x2f1   :  { %1367 = vmatpush.msrb.mxu3 %v3058_v40 }
 0x2f3   :  { %1368 = vmatpush.msrb.mxu3 %v3071_v41 }
 0x2f5   :  { %1369 = vmatpush.msrb.mxu3 %v3084_v57 }
 0x2f7   :  { %1370 = vmatpush.msrb.mxu3 %v3097_v47 }
 0x2f9   :  { %1371 = vmatpush.msrb.mxu3 %v3110_v36 }
 0x2fb   :  { %1372 = vmatpush.msrb.mxu3 %v3123_v49 }
 0x2fd   :  { %1373 = vmatpush.msrb.mxu3 %v3136_v0 }
 0x2ff   :  { %1374 = vmatpush.msrb.mxu3 %v3149_v46 }
 0x301   :  { %1375 = vmatpush.msrb.mxu3 %v3162_v25 }
 0x303   :  { %1376 = vmatpush.msrb.mxu3 %v3181_v59 }
 0x305   :  { %1557 = vmatpush.msra.mxu3 %v2867_v52 }
 0x307   :  { %1558 = vmatpush.msra.mxu3 %v2873_v53 }
 0x309   :  { %1559 = vmatpush.msra.mxu3 %v2879_v55 }
 0x30b   :  { %1560 = vmatpush.msra.mxu3 %v2885_v12 }
 0x30d   :  { %1561 = vmatpush.msra.mxu3 %v2891_v17 }
 0x30f   :  { %1562 = vmatpush.msra.mxu3 %v2897_v18 }
 0x311   :  { %1563 = vmatpush.msra.mxu3 %v2903_v13 }
 0x313   :  { %1564 = vmatpush.msra.mxu3 %v2909_v15  ;;  %v2038_v15 = vld [vmem:[%s3669_s2 + $0x300] ss:$8 sm:$0xf] }
 0x314   :  { %v938_v13 = vperm.slane %v2038_v15, 1  ;;  %v939_v54 = vperm.slane %v2038_v15, 2 }
 0x315   :  { %1565 = vmatpush.msra.mxu3 %v2915_v20 }
 0x317   :  { %1566 = vmatpush.msra.mxu3 %v2921_v19 }
 0x319   :  { %1567 = vmatpush.msra.mxu3 %v2927_v21  ;;  %v937_v21 = vperm.slane %v2038_v15, 0 }
 0x31b   :  { %1568 = vmatpush.msra.mxu3 %v2936_v23 }
 0x31d   :  { %1569 = vmatpush.msra.mxu3 %v2942_v24 }
 0x31f   :  { %1570 = vmatpush.msra.mxu3 %v2953_v50 }
 0x321   :  { %1571 = vmatpush.msra.mxu3 %v2968_v29  ;;  %v1005_v20 = vpop.f32.mrf.mxu1 }
 0x323   :  { %1572 = vmatpush.msra.mxu3 %v2986_v63 }
 0x327   :  { %v965_v11 = vpop.f32.mrf.mxu3 }
 0x328   :  { %v966_v12 = vadd.f32 %v965_v11, %v937_v21 }
 0x329   :  { %v1147_v17 = vpop.f32.mrf.mxu1 }
 0x32a   :  { %v1194_v24 = vrot.slane %v1147_v17, 4 }
 0x32f   :  { %v985_v19 = vpop.f32.mrf.mxu3 }
 0x330   :  { %v986_v18 = vadd.f32 %v985_v19, %v938_v13 }
 0x332   :  { %v1032_v23 = vrot.slane %v986_v18, 4 }
 0x334   :  { %v1037_v50 = vsel %vm1034_vm10, %v1032_v23, %v966_v12  ;;  %v3366_v63 = vsel %vm1034_vm10, %v966_v12, %v1032_v23  ;;  %v940_v12 = vperm.slane %v2038_v15, 3  ;;  %v1025_v23 = vpop.f32.mrf.mxu2 }
 0x335   :  { %3737 = vst [vmem:[#allocation30_spill] sm:$0xff] %v3366_v63  ;;  %v3369_v53 = vrot.slane %v1037_v50, 4 }
 0x336   :  { %v1026_v50 = vadd.f32 %v1025_v23, %v940_v12 }
 0x337   :  { %3738 = vst [vmem:[#allocation31_spill] sm:$0xff] %v3369_v53 }
 0x347   :  { %v1127_v29 = vpop.f32.mrf.mxu3 }
 0x348   :  { %v1196_v55 = vsel %vm1034_vm10, %v1127_v29, %v1194_v24 }
 0x349   :  { %v1198_v43 = vrot.slane %v1196_v55, 1  ;;  %v1204_v52 = vadd.f32 %v1196_v55, %v3366_v63  ;;  %v1033_v55 = vrot.slane %v1026_v50, 4 }
 0x34b   :  { %v1206_v13 = vadd.f32 %v1198_v43, %v3369_v53  ;;  %v2043_v19 = vmul.f32 -1.442695, %v1204_v52  ;;  %v1006_v43 = vadd.f32 %v1005_v20, %v939_v54 }
 0x34d   :  { %2090 = vpow2.f32 %v2043_v19  ;;  %v2045_v18 = vmul.f32 -1.442695, %v1206_v13  ;;  %v1167_v13 = vpop.f32.mrf.mxu2 }
 0x34f   :  { %2092 = vpow2.f32 %v2045_v18  ;;  %v1039_v18 = vsel %vm1034_vm10, %v1033_v55, %v1006_v43 }
 0x350   :  { %v3378_v12 = vrot.slane %v1039_v18, 4 }
 0x353   :  { %v2091_v17 = vpop.eup %2090 }
 0x354   :  { %v1220_v11 = vadd.f32 1.0, %v2091_v17 }
 0x355   :  { %v2093_v21 = vpop.eup %2092 }
 0x356   :  { %v1222_v9 = vadd.f32 1.0, %v2093_v21  ;;  %2094 = vrcp.f32 %v1220_v11  ;;  %v3375_v21 = vsel %vm1034_vm10, %v1006_v43, %v1033_v55  ;;  %vm1229_vm11 = vweird.f32 %v1220_v11 }
 0x357   :  { %3739 = vst [vmem:[#allocation32_spill] sm:$0xff] %v3375_v21 }
 0x358   :  { %2096 = vrcp.f32 %v1222_v9  ;;  %vm1259_vm15 = vweird.f32 %v1222_v9 }
 0x35c   :  { %v2095_v24 = vpop.eup %2094 }
 0x35d   :  { %v1225_v59 = vmul.f32 %v2095_v24, %v1220_v11  ;;  %vm1230_vm12 = vweird.f32 %v2095_v24 }
 0x35e   :  { %v2097_v29 = vpop.eup %2096  ;;  %vm1231_vm14 = vmor %vm1229_vm11, %vm1230_vm12 }
 0x35f   :  { %v1255_v63 = vmul.f32 %v2097_v29, %v1222_v9  ;;  %v1226_v52 = vsub.f32 1.0, %v1225_v59  ;;  %vm1260_vm13 = vweird.f32 %v2097_v29 }
 0x360   :  { %vm1261_vm0 = vmor %vm1259_vm15, %vm1260_vm13 }
 0x361   :  { %v1256_v53 = vsub.f32 1.0, %v1255_v63  ;;  %v1227_v14 = vmul.f32 %v2095_v24, %v1226_v52  ;;  %v1235_v63 = vand.u32 2147483648, %v1220_v11  ;;  %v1233_v52 = vand.u32 2147483647, %v1220_v11 }
 0x363   :  { %v1257_v50 = vmul.f32 %v2097_v29, %v1256_v53  ;;  %v1228_v25 = vadd.f32 %v2095_v24, %v1227_v14  ;;  %v1236_v18 = vor.u32 1.1754944e-38, %v1235_v63  ;;  %vm1234_vm2 = vcmp.eq.f32.partialorder %v1233_v52, 8.507059e+37 }
 0x365   :  { %v1232_v53 = vsel %vm1231_vm14, %v2095_v24, %v1228_v25  ;;  %v2222_v24 = vmov 1  }
 0x366   :  { %2082 = vset.pattern.permute.xlu0 %v2222_v24 }
 0x367   :  { %v1187_v19 = vpop.f32.mrf.mxu3  ;;  %1526 = vperm.xlu0 %2082, %v3186_v61  }
 0x368   :  { %v1195_v17 = vrot.slane %v1187_v19, 4  ;;  %v1258_v19 = vadd.f32 %v2097_v29, %v1257_v50 }
 0x36a   :  { %v1197_v51 = vsel %vm1034_vm10, %v1167_v13, %v1195_v17  ;;  %v1265_v13 = vand.u32 2147483648, %v1222_v9  ;;  %v1262_v14 = vsel %vm1261_vm0, %v2097_v29, %v1258_v19 }
 0x36b   :  { %v1199_v15 = vrot.slane %v1197_v51, 1  ;;  %v1205_v23 = vadd.f32 %v1197_v51, %v3375_v21  ;;  %v1263_v51 = vand.u32 2147483647, %v1222_v9 }
 0x36d   :  { %v1207_v20 = vadd.f32 %v1199_v15, %v3378_v12  ;;  %v2044_v54 = vmul.f32 -1.442695, %v1205_v23  ;;  %v1286_v59 = vrot.slane %v1205_v23, 4  ;;  %v1237_v15 = vsel %vm1234_vm2, %v1236_v18, %v1232_v53 }
 0x36e   :  { %v1266_v23 = vor.u32 1.1754944e-38, %v1265_v13  ;;  %vm1264_vm3 = vcmp.eq.f32.partialorder %v1263_v51, 8.507059e+37 }
 0x36f   :  { %2098 = vpow2.f32 %v2044_v54  ;;  %v2046_v55 = vmul.f32 -1.442695, %v1207_v20  ;;  %v1287_v43 = vrot.slane %v1207_v20, 4 }
 0x370   :  { %2100 = vtanh.f32 %v1286_v59  ;;  %v1267_v50 = vsel %vm1264_vm3, %v1266_v23, %v1262_v14 }
 0x371   :  { %2102 = vpow2.f32 %v2046_v55  ;;  %v1294_v55 = vrot.slane %v1237_v15, 4  ;;  %v1295_v25 = vrot.slane %v1267_v50, 4 }
 0x372   :  { %2104 = vtanh.f32 %v1287_v43 }
 0x373   :  { %v1298_v29 = vmul.f32 0.0, %v1294_v55  ;;  %v1299_v52 = vmul.f32 0.0, %v1295_v25 }
 0x375   :  { %v2099_v17 = vpop.eup %2098 }
 0x376   :  { %v2101_v54 = vpop.eup %2100  ;;  %v1221_v20 = vadd.f32 1.0, %v2099_v17 }
 0x377   :  { %v2103_v11 = vpop.eup %2102  ;;  %v1300_v9 = vmul.f32 %v2101_v54, %v1237_v15 }
 0x378   :  { %v1223_v59 = vadd.f32 1.0, %v2103_v11  ;;  %2106 = vrcp.f32 %v1221_v20  ;;  %v2105_v21 = vpop.eup %2104  ;;  %v1250_v17 = vand.u32 2147483648, %v1221_v20  ;;  %v1248_v54 = vand.u32 2147483647, %v1221_v20 }
 0x379   :  { %v1301_v63 = vmul.f32 %v2105_v21, %v1267_v50  ;;  %v3383_v19 = vadd.f32 %v1300_v9, %v1298_v29  ;;  %vm1244_vm5 = vweird.f32 %v1221_v20 }
 0x37a   :  { %2108 = vrcp.f32 %v1223_v59  ;;  %v1280_v21 = vand.u32 2147483648, %v1223_v59  ;;  %v1278_v55 = vand.u32 2147483647, %v1223_v59  ;;  %v1251_v25 = vor.u32 1.1754944e-38, %v1250_v17  ;;  %v3766_v17 = vld [vmem:[#allocation20_spill] sm:$0xff] }
 0x37b   :  { %3740 = vst [vmem:[#allocation33_spill] sm:$0xff] %v3383_v19  ;;  %v3385_v51 = vadd.f32 %v1301_v63, %v1299_v52  ;;  %2110 = vtanh.f32 %v3383_v19  ;;  %vm1249_vm8 = vcmp.eq.f32.partialorder %v1248_v54, 8.507059e+37  ;;  %vm1274_vm9 = vweird.f32 %v1223_v59 }
 0x37c   :  { %v1281_v52 = vor.u32 1.1754944e-38, %v1280_v21  ;;  %vm1279_vm12 = vcmp.eq.f32.partialorder %v1278_v55, 8.507059e+37 }
 0x37d   :  { %3741 = vst [vmem:[#allocation34_spill] sm:$0xff] %v3385_v51  ;;  %2112 = vtanh.f32 %v3385_v51 }
 0x37e   :  { %v2107_v43 = vpop.eup %2106 }
 0x37f   :  { %v1240_v13 = vmul.f32 %v2107_v43, %v1221_v20  ;;  %vm1245_vm4 = vweird.f32 %v2107_v43 }
 0x380   :  { %v2109_v53 = vpop.eup %2108  ;;  %vm1246_vm7 = vmor %vm1244_vm5, %vm1245_vm4 }
 0x381   :  { %v1241_v18 = vsub.f32 1.0, %v1240_v13  ;;  %v1270_v14 = vmul.f32 %v2109_v53, %v1223_v59  ;;  %vm1275_vm6 = vweird.f32 %v2109_v53  ;;  %v2111_v29 = vpop.eup %2110  ;;  %v3762_v59 = vld [vmem:[#allocation16_spill] sm:$0xff] }
 0x382   :  { %vm1276_vm11 = vmor %vm1274_vm9, %vm1275_vm6 }
 0x383   :  { %v1271_v15 = vsub.f32 1.0, %v1270_v14  ;;  %v1242_v23 = vmul.f32 %v2107_v43, %v1241_v18  ;;  %v2113_v14 = vpop.eup %2112 }
 0x385   :  { %v1243_v11 = vadd.f32 %v2107_v43, %v1242_v23  ;;  %v1272_v50 = vmul.f32 %v2109_v53, %v1271_v15 }
 0x387   :  { %v1247_v9 = vsel %vm1246_vm7, %v2107_v43, %v1243_v11  ;;  %v1273_v24 = vadd.f32 %v2109_v53, %v1272_v50  ;;  %v3763_v43 = vld [vmem:[#allocation17_spill] sm:$0xff] }
 0x388   :  { %v1252_v63 = vsel %vm1249_vm8, %v1251_v25, %v1247_v9 }
 0x389   :  { %v1277_v13 = vsel %vm1276_vm11, %v2109_v53, %v1273_v24  ;;  %v1306_v18 = vmul.f32 %v2111_v29, %v1252_v63  ;;  %v3765_v53 = vld [vmem:[#allocation19_spill] sm:$0xff] }
 0x38a   :  { %v1282_v20 = vsel %vm1279_vm12, %v1281_v52, %v1277_v13  ;;  %v3767_v24 = vld [vmem:[#allocation31_spill] sm:$0xff]  ;;  %v3768_v13 = vld [vmem:[#allocation30_spill] sm:$0xff] }
 0x38b   :  { %v1307_v19 = vmul.f32 %v2113_v14, %v1282_v20  ;;  %v1315_v23 = vperm.slane %v1306_v18, 0 }
 0x38d   :  { %v1316_v15 = vperm.slane %v1307_v19, 0  ;;  %v3764_v19 = vld [vmem:[#allocation18_spill] sm:$0xff] }
 0x38f   :  { %v3390_v51 = vsel %vm458_vm1, %v1316_v15, %v1315_v23 }
 0x390   :  { %1337 = vmatmul.f32.vlgmr.msra.gmra.mxu1 %v3390_v51  ;;  %1357 = vmatmul.f32.vlgmr.msra.gmra.mxu2 %v3390_v51 }
 0x391   :  { %1377 = vmatmul.f32.vlgmr.msrb.gmra.mxu3 %v3390_v51  ;;  %1577 = vmatpush.msra.mxu1 %v2973_v1  ;;  %v3744_v1 = vld [vmem:[#allocation24_spill] sm:$0xff] }
 0x392   :  { %1597 = vmatpush.msra.mxu2 %v3167_v56  ;;  %1755 = vmatpush.msrb.mxu3 %v2948_v8  ;;  %v3742_v8 = vld [vmem:[#allocation26_spill] sm:$0xff] }
 0x393   :  { %1578 = vmatpush.msra.mxu1 %v2991_v31  ;;  %v3746_v31 = vld [vmem:[#allocation28_spill] sm:$0xff] }
 0x394   :  { %1598 = vmatpush.msra.mxu2 %v3176_v58  ;;  %1756 = vmatpush.msrb.mxu3 %v2961_v28  ;;  %v3743_v28 = vld [vmem:[#allocation27_spill] sm:$0xff] }
 0x395   :  { %1579 = vmatpush.msra.mxu1 %v3004_v32  ;;  %v3748_v32 = vld [vmem:[#allocation22_spill] sm:$0xff] }
 0x396   :  { %1599 = vmatpush.msra.mxu2 %v3194_v60  ;;  %1757 = vmatpush.msrb.mxu3 %v2978_v30  ;;  %v3745_v30 = vld [vmem:[#allocation21_spill] sm:$0xff] }
 0x397   :  { %1580 = vmatpush.msra.mxu1 %v3017_v34  ;;  %v3750_v34 = vld [vmem:[#allocation5_spill] sm:$0xff] }
 0x398   :  { %1397 = vmatmul.f32.vlgmr.msrb.gmra.mxu1 %v3390_v51  ;;  %1600 = vmatpush.msra.mxu2 %v3202_v6 }
 0x399   :  { %1581 = vmatpush.msra.mxu1 %v3032_v10  ;;  %1758 = vmatpush.msrb.mxu3 %v2996_v3  ;;  %v3747_v3 = vld [vmem:[#allocation25_spill] sm:$0xff]  ;;  %v3752_v10 = vld [vmem:[#allocation6_spill] sm:$0xff] }
 0x39a   :  { %1601 = vmatpush.msra.mxu2 %v3210_v2 }
 0x39b   :  { %1582 = vmatpush.msra.mxu1 %v3045_v38  ;;  %1759 = vmatpush.msrb.mxu3 %v3010_v33  ;;  %v3749_v33 = vld [vmem:[#allocation29_spill] sm:$0xff]  ;;  %v3754_v38 = vld [vmem:[#allocation8_spill] sm:$0xff] }
 0x39c   :  { %1602 = vmatpush.msra.mxu2 %v3219_v45 }
 0x39d   :  { %1583 = vmatpush.msra.mxu1 %v3058_v40  ;;  %1760 = vmatpush.msrb.mxu3 %v3024_v35  ;;  %v3751_v35 = vld [vmem:[#allocation23_spill] sm:$0xff]  ;;  %v3756_v40 = vld [vmem:[#allocation10_spill] sm:$0xff] }
 0x39e   :  { %1603 = vmatpush.msra.mxu2 %v3227_v4 }
 0x39f   :  { %1584 = vmatpush.msra.mxu1 %v3071_v41  ;;  %1761 = vmatpush.msrb.mxu3 %v3037_v37  ;;  %v3753_v37 = vld [vmem:[#allocation7_spill] sm:$0xff] }
 0x3a0   :  { %1604 = vmatpush.msra.mxu2 %v3235_v5 }
 0x3a1   :  { %1585 = vmatpush.msra.mxu1 %v3084_v57  ;;  %1762 = vmatpush.msrb.mxu3 %v3050_v39  ;;  %v3755_v39 = vld [vmem:[#allocation9_spill] sm:$0xff] }
 0x3a2   :  { %1605 = vmatpush.msra.mxu2 %v3742_v8 }
 0x3a3   :  { %1586 = vmatpush.msra.mxu1 %v3097_v47  ;;  %1763 = vmatpush.msrb.mxu3 %v3063_v7  ;;  %v3757_v7 = vld [vmem:[#allocation11_spill] sm:$0xff] }
 0x3a4   :  { %1606 = vmatpush.msra.mxu2 %v3743_v28 }
 0x3a5   :  { %1587 = vmatpush.msra.mxu1 %v3110_v36  ;;  %1764 = vmatpush.msrb.mxu3 %v3076_v44  ;;  %v3758_v44 = vld [vmem:[#allocation12_spill] sm:$0xff] }
 0x3a6   :  { %1607 = vmatpush.msra.mxu2 %v3259_v22 }
 0x3a7   :  { %1588 = vmatpush.msra.mxu1 %v3123_v49  ;;  %1765 = vmatpush.msrb.mxu3 %v3089_v16  ;;  %v3759_v16 = vld [vmem:[#allocation13_spill] sm:$0xff] }
 0x3a8   :  { %1608 = vmatpush.msra.mxu2 %v3267_v26 }
 0x3a9   :  { %1589 = vmatpush.msra.mxu1 %v3136_v0  ;;  %1766 = vmatpush.msrb.mxu3 %v3102_v48  ;;  %v3760_v48 = vld [vmem:[#allocation14_spill] sm:$0xff] }
 0x3aa   :  { %1609 = vmatpush.msra.mxu2 %v3275_v27 }
 0x3ab   :  { %1590 = vmatpush.msra.mxu1 %v3149_v46  ;;  %1767 = vmatpush.msrb.mxu3 %v3115_v42  ;;  %v3761_v42 = vld [vmem:[#allocation15_spill] sm:$0xff] }
 0x3ac   :  { %1610 = vmatpush.msra.mxu2 %v3283_v62 }
 0x3ad   :  { %1591 = vmatpush.msra.mxu1 %v3744_v1  ;;  %1768 = vmatpush.msrb.mxu3 %v3745_v30  ;;  %v3769_v30 = vld [vmem:[#allocation32_spill] sm:$0xff] }
 0x3ae   :  { %1611 = vmatpush.msra.mxu2 %v3746_v31 }
 0x3af   :  { %1592 = vmatpush.msra.mxu1 %v3747_v3  ;;  %1769 = vmatpush.msrb.mxu3 %v3748_v32 }
 0x3b0   :  { %1612 = vmatpush.msra.mxu2 %v3749_v33 }
 0x3b1   :  { %1775 = vmatpush.msrb.mxu1 %v3750_v34  ;;  %1770 = vmatpush.msrb.mxu3 %v3751_v35 }
 0x3b3   :  { %1776 = vmatpush.msrb.mxu1 %v3752_v10 }
 0x3b5   :  { %1777 = vmatpush.msrb.mxu1 %v3753_v37 }
 0x3b7   :  { %1778 = vmatpush.msrb.mxu1 %v3754_v38 }
 0x3b9   :  { %1779 = vmatpush.msrb.mxu1 %v3755_v39 }
 0x3bb   :  { %1780 = vmatpush.msrb.mxu1 %v3756_v40 }
 0x3bd   :  { %1781 = vmatpush.msrb.mxu1 %v3757_v7 }
 0x3bf   :  { %1782 = vmatpush.msrb.mxu1 %v3758_v44 }
 0x3c1   :  { %1783 = vmatpush.msrb.mxu1 %v3759_v16 }
 0x3c3   :  { %1784 = vmatpush.msrb.mxu1 %v3760_v48 }
 0x3c5   :  { %1785 = vmatpush.msrb.mxu1 %v3761_v42 }
 0x3c7   :  { %1786 = vmatpush.msrb.mxu1 %v3762_v59 }
 0x3c9   :  { %1787 = vmatpush.msrb.mxu1 %v3763_v43 }
 0x3cb   :  { %1788 = vmatpush.msrb.mxu1 %v3764_v19 }
 0x3cd   :  { %1789 = vmatpush.msrb.mxu1 %v3765_v53 }
 0x3cf   :  { %1790 = vmatpush.msrb.mxu1 %v3766_v17 }
 0x40d   :  { %v1338_v54 = vpop.f32.mrf.mxu1 }
 0x413   :  { %v1358_v21 = vpop.f32.mrf.mxu2 }
 0x414   :  { %v1405_v11 = vrot.slane %v1358_v21, 4  ;;  %v1378_v63 = vpop.f32.mrf.mxu3 }
 0x415   :  { %v1398_v50 = vpop.f32.mrf.mxu1 }
 0x416   :  { %v1407_v55 = vsel %vm1034_vm10, %v1338_v54, %v1405_v11  ;;  %v1406_v25 = vrot.slane %v1398_v50, 4 }
 0x417   :  { %v1409_v9 = vrot.slane %v1407_v55, 7  ;;  %v1417_v29 = vadd.f32 %v1407_v55, %v3767_v24 }
 0x418   :  { %v1408_v52 = vsel %vm1034_vm10, %v1378_v63, %v1406_v25 }
 0x419   :  { %v1415_v18 = vadd.f32 %v1409_v9, %v3768_v13  ;;  %v2049_v14 = vmul.f32 -1.442695, %v1417_v29  ;;  %v1410_v20 = vrot.slane %v1408_v52, 7  ;;  %v1418_v23 = vadd.f32 %v1408_v52, %v3378_v12 }
 0x41b   :  { %v2047_v15 = vmul.f32 -1.442695, %v1415_v18  ;;  %2114 = vpow2.f32 %v2049_v14  ;;  %v1416_v32 = vadd.f32 %v1410_v20, %v3769_v30  ;;  %v2050_v34 = vmul.f32 -1.442695, %v1418_v23 }
 0x41c   :  { %v1498_v42 = vrot.slane %v1418_v23, 4 }
 0x41d   :  { %2116 = vpow2.f32 %v2047_v15  ;;  %v2048_v35 = vmul.f32 -1.442695, %v1416_v32  ;;  %v1497_v50 = vrot.slane %v1416_v32, 4  ;;  %v2223_v15 = vmov 2  }
 0x41e   :  { %2118 = vpow2.f32 %v2050_v34  ;;  %2083 = vset.pattern.permute.xlu1 %v2223_v15 }
 0x41f   :  { %2120 = vpow2.f32 %v2048_v35  ;;  %1744 = vperm.xlu1 %2083, %v3186_v61  }
 0x421   :  { %v2115_v10 = vpop.eup %2114 }
 0x422   :  { %v1433_v37 = vadd.f32 1.0, %v2115_v10 }
 0x423   :  { %v2117_v38 = vpop.eup %2116 }
 0x424   :  { %v2119_v39 = vpop.eup %2118  ;;  %v1431_v40 = vadd.f32 1.0, %v2117_v38  ;;  %2122 = vrcp.f32 %v1433_v37  ;;  %v1476_v21 = vand.u32 2147483648, %v1433_v37  ;;  %v1474_v9 = vand.u32 2147483647, %v1433_v37 }
 0x425   :  { %v2121_v7 = vpop.eup %2120  ;;  %v3466_v44 = vadd.f32 1.0, %v2119_v39  ;;  %vm1470_vm14 = vweird.f32 %v1433_v37  ;;  %v3770_v39 = vld [vmem:[#allocation34_spill] sm:$0xff] }
 0x426   :  { %2124 = vrcp.f32 %v1431_v40  ;;  %v3468_v16 = vadd.f32 1.0, %v2121_v7  ;;  %v1446_v29 = vand.u32 2147483648, %v1431_v40  ;;  %v1444_v63 = vand.u32 2147483647, %v1431_v40 }
 0x427   :  { %2126 = vrcp.f32 %v3466_v44  ;;  %v1477_v20 = vor.u32 1.1754944e-38, %v1476_v21  ;;  %vm1440_vm2 = vweird.f32 %v1431_v40  ;;  %vm1475_vm3 = vcmp.eq.f32.partialorder %v1474_v9, 8.507059e+37  ;;  %v3771_v21 = vld [vmem:[#allocation33_spill] sm:$0xff] }
 0x428   :  { %2128 = vrcp.f32 %v3468_v16  ;;  %v1447_v10 = vor.u32 1.1754944e-38, %v1446_v29  ;;  %v1512_v7 = vrot.slane %v3770_v39, 7  ;;  %vm1445_vm5 = vcmp.eq.f32.partialorder %v1444_v63, 8.507059e+37 }
 0x429   :  { %2130 = vtanh.f32 %v1498_v42  ;;  %v1491_v63 = vand.u32 2147483648, %v3466_v44  ;;  %vm1485_vm8 = vweird.f32 %v3466_v44  ;;  %vm1455_vm11 = vweird.f32 %v3468_v16 }
 0x42a   :  { %v2123_v48 = vpop.eup %2122  ;;  %2132 = vtanh.f32 %v1497_v50  ;;  %v1459_v15 = vand.u32 2147483647, %v3468_v16 }
 0x42b   :  { %v1466_v59 = vmul.f32 %v2123_v48, %v1433_v37  ;;  %vm1471_vm13 = vweird.f32 %v2123_v48 }
 0x42c   :  { %v2125_v43 = vpop.eup %2124  ;;  %vm1472_vm0 = vmor %vm1470_vm14, %vm1471_vm13  ;;  %vm1460_vm14 = vcmp.eq.f32.partialorder %v1459_v15, 8.507059e+37 }
 0x42d   :  { %v3472_v19 = vpop.eup %2126  ;;  %v1436_v53 = vmul.f32 %v2125_v43, %v1431_v40  ;;  %v1467_v17 = vsub.f32 1.0, %v1466_v59  ;;  %vm1441_vm15 = vweird.f32 %v2125_v43  ;;  %v1511_v40 = vrot.slane %v3771_v21, 7 }
 0x42e   :  { %v3474_v54 = vpop.eup %2128  ;;  %v1481_v11 = vmul.f32 %v3472_v19, %v3466_v44  ;;  %vm1442_vm4 = vmor %vm1440_vm2, %vm1441_vm15  ;;  %vm1486_vm6 = vweird.f32 %v3472_v19 }
 0x42f   :  { %v1437_v55 = vsub.f32 1.0, %v1436_v53  ;;  %v1468_v25 = vmul.f32 %v2123_v48, %v1467_v17  ;;  %v1451_v52 = vmul.f32 %v3474_v54, %v3468_v16  ;;  %v2131_v35 = vpop.eup %2130  ;;  %vm1456_vm7 = vweird.f32 %v3474_v54  ;;  %vm1487_vm9 = vmor %vm1485_vm8, %vm1486_vm6 }
 0x430   :  { %v1482_v23 = vsub.f32 1.0, %v1481_v11  ;;  %vm1457_vm12 = vmor %vm1455_vm11, %vm1456_vm7 }
 0x431   :  { %v1438_v18 = vmul.f32 %v2125_v43, %v1437_v55  ;;  %v1469_v14 = vadd.f32 %v2123_v48, %v1468_v25  ;;  %v1452_v38 = vsub.f32 1.0, %v1451_v52  ;;  %v2133_v55 = vpop.eup %2132 }
 0x432   :  { %v1483_v17 = vmul.f32 %v3472_v19, %v1482_v23  ;;  %v1311_v23 = vpop.permute.xlu0 %1310 }
 0x433   :  { %v1439_v32 = vadd.f32 %v2125_v43, %v1438_v18  ;;  %v1473_v34 = vsel %vm1472_vm0, %v2123_v48, %v1469_v14  ;;  %v1453_v61 = vmul.f32 %v3474_v54, %v1452_v38  ;;  %v1489_v14 = vand.u32 2147483647, %v3466_v44 }
 0x434   :  { %v1478_v37 = vsel %vm1475_vm3, %v1477_v20, %v1473_v34  ;;  %v1484_v52 = vadd.f32 %v3472_v19, %v1483_v17  ;;  %v1461_v20 = vand.u32 2147483648, %v3468_v16  ;;  %v1492_v34 = vor.u32 1.1754944e-38, %v1491_v63 }
 0x435   :  { %v1443_v42 = vsel %vm1442_vm4, %v2125_v43, %v1439_v32  ;;  %v1506_v59 = vrot.slane %v1478_v37, 4  ;;  %v1518_v50 = vmul.f32 %v2131_v35, %v1478_v37  ;;  %v1454_v18 = vadd.f32 %v3474_v54, %v1453_v61 }
 0x436   :  { %v1448_v53 = vsel %vm1445_vm5, %v1447_v10, %v1443_v42  ;;  %v1488_v32 = vsel %vm1487_vm9, %v3472_v19, %v1484_v52  ;;  %vm1490_vm13 = vcmp.eq.f32.partialorder %v1489_v14, 8.507059e+37  ;;  %v1462_v37 = vor.u32 1.1754944e-38, %v1461_v20 }
 0x437   :  { %v1505_v11 = vrot.slane %v1448_v53, 4  ;;  %v1516_v48 = vmul.f32 %v1512_v7, %v1506_v59  ;;  %v1517_v9 = vmul.f32 %v2133_v55, %v1448_v53  ;;  %v1458_v35 = vsel %vm1457_vm12, %v3474_v54, %v1454_v18  ;;  %v2186_v54 = vld [vmem:[%s3669_s2 + $0x2f0] sm:$0xff] }
 0x438   :  { %v1493_v44 = vsel %vm1490_vm13, %v1492_v34, %v1488_v32  ;;  %v1463_v7 = vsel %vm1460_vm14, %v1462_v37, %v1458_v35  ;;  %v1319_v19 = vmul.f32 %v3390_v51, %v1311_v23  ;;  %v2188_v51 = vld [vmem:[%s3669_s2 + $0x2b0] sm:$0xff] }
 0x439   :  { %v1515_v25 = vmul.f32 %v1511_v40, %v1505_v11  ;;  %v3485_v29 = vadd.f32 %v1518_v50, %v1516_v48  ;;  %v2187_v11 = vld [vmem:[%s3669_s2 + $0x2d0] sm:$0xff] }
 0x43a   :  { %v1527_v59 = vpop.permute.xlu0 %1526  ;;  %v2189_v48 = vld [vmem:[%s3669_s2 + $0x290] sm:$0xff] }
 0x43b   :  { %v3489_v43 = vadd.f32 %v1517_v9, %v1515_v25  ;;  %2134 = vtanh.f32 %v3485_v29 }
 0x43d   :  { %2136 = vtanh.f32 %v3489_v43 }
 0x441   :  { %v2135_v10 = vpop.eup %2134 }
 0x442   :  { %v1524_v38 = vmul.f32 %v2135_v10, %v1493_v44 }
 0x443   :  { %v2137_v39 = vpop.eup %2136 }
 0x444   :  { %v1523_v42 = vmul.f32 %v2137_v39, %v1463_v7  ;;  %v1532_v17 = vperm.slane %v1524_v38, 1 }
 0x446   :  { %v1531_v53 = vperm.slane %v1523_v42, 1 }
 0x448   :  { %v1533_v16 = vsel %vm458_vm1, %v1532_v17, %v1531_v53  ;;  %v2224_v17 = vmov 3  }
 0x449   :  { %v1535_v21 = vmul.f32 %v1533_v16, %v1527_v59  ;;  %1553 = vmatmul.f32.vlgmr.msrb.gmra.mxu2 %v1533_v16  ;;  %1573 = vmatmul.f32.vlgmr.msra.gmra.mxu3 %v1533_v16 }
 0x44a   :  { %1593 = vmatmul.f32.vlgmr.msra.gmra.mxu1 %v1533_v16  ;;  %1795 = vmatpush.msrb.mxu2 %v2186_v54  ;;  %v2193_v54 = vld [vmem:[%s3667_s0 + $0x100] sm:$0x3] }
 0x44b   :  { %v3508_v40 = vadd.f32 %v1535_v21, %v1319_v19  ;;  %1815 = vmatpush.msra.mxu3 %v3167_v56  ;;  %v2190_v56 = vld [vmem:[%s3669_s2 + $0x270] sm:$0xff]  ;;  %2084 = vset.pattern.permute.xlu1 %v2224_v17 }
 0x44c   :  { %1796 = vmatpush.msrb.mxu2 %v2187_v11  ;;  %2085 = vset.pattern.permute.xlu0 %v2224_v17 }
 0x44d   :  { %1816 = vmatpush.msra.mxu3 %v3176_v58  ;;  %v2191_v58 = vld [vmem:[%s3669_s2 + $0x250] sm:$0xff]  ;;  %1962 = vperm.xlu1 %2084, %v2193_v54  }
 0x44e   :  { %1797 = vmatpush.msrb.mxu2 %v2188_v51  ;;  %v1982_v54 = vld [vmem:[%s3668_s1 + $0x230] sm:$0xff] }
 0x44f   :  { %1817 = vmatpush.msra.mxu3 %v3194_v60  ;;  %v2192_v60 = vld [vmem:[%s3669_s2 + $0x230] sm:$0xff] }
 0x450   :  { %1798 = vmatpush.msrb.mxu2 %v2189_v48 }
 0x451   :  { %1613 = vmatmul.f32.vlgmr.msra.gmra.mxu2 %v1533_v16  ;;  %1818 = vmatpush.msra.mxu3 %v3202_v6 }
 0x452   :  { %1799 = vmatpush.msrb.mxu2 %v2190_v56  ;;  %v1729_v56 = vrot.slane %v3489_v43, 7 }
 0x453   :  { %1819 = vmatpush.msra.mxu3 %v3210_v2 }
 0x454   :  { %1800 = vmatpush.msrb.mxu2 %v2191_v58 }
 0x455   :  { %1820 = vmatpush.msra.mxu3 %v3219_v45 }
 0x456   :  { %1801 = vmatpush.msrb.mxu2 %v2192_v60 }
 0x457   :  { %1821 = vmatpush.msra.mxu3 %v3227_v4 }
 0x458   :  { %1802 = vmatpush.msrb.mxu2 %v3071_v41 }
 0x459   :  { %1822 = vmatpush.msra.mxu3 %v3235_v5 }
 0x45a   :  { %1803 = vmatpush.msrb.mxu2 %v3084_v57 }
 0x45b   :  { %1823 = vmatpush.msra.mxu3 %v3742_v8 }
 0x45c   :  { %1804 = vmatpush.msrb.mxu2 %v3097_v47 }
 0x45d   :  { %1824 = vmatpush.msra.mxu3 %v3743_v28 }
 0x45e   :  { %1805 = vmatpush.msrb.mxu2 %v3110_v36 }
 0x45f   :  { %1825 = vmatpush.msra.mxu3 %v3259_v22 }
 0x460   :  { %1806 = vmatpush.msrb.mxu2 %v3123_v49 }
 0x461   :  { %1826 = vmatpush.msra.mxu3 %v3267_v26 }
 0x462   :  { %1807 = vmatpush.msrb.mxu2 %v3136_v0 }
 0x463   :  { %1827 = vmatpush.msra.mxu3 %v3275_v27 }
 0x464   :  { %1808 = vmatpush.msrb.mxu2 %v3149_v46 }
 0x465   :  { %1828 = vmatpush.msra.mxu3 %v3283_v62 }
 0x466   :  { %1809 = vmatpush.msrb.mxu2 %v3744_v1 }
 0x467   :  { %1829 = vmatpush.msra.mxu3 %v3746_v31 }
 0x468   :  { %1810 = vmatpush.msrb.mxu2 %v3747_v3 }
 0x469   :  { %1830 = vmatpush.msra.mxu3 %v3749_v33 }
 0x4c7   :  { %v1594_v22 = vpop.f32.mrf.mxu1 }
 0x4cc   :  { %v1554_v41 = vpop.f32.mrf.mxu2  ;;  %v1574_v57 = vpop.f32.mrf.mxu3 }
 0x4cd   :  { %v1621_v47 = vrot.slane %v1574_v57, 4 }
 0x4cf   :  { %v1623_v36 = vsel %vm1034_vm10, %v1554_v41, %v1621_v47  ;;  %v1730_v47 = vrot.slane %v3485_v29, 7 }
 0x4d0   :  { %v1625_v49 = vrot.slane %v1623_v36, 6  ;;  %v1627_v0 = vrot.slane %v1623_v36, 7 }
 0x4d2   :  { %v1633_v6 = vadd.f32 %v1625_v49, %v3768_v13  ;;  %v1635_v46 = vadd.f32 %v1627_v0, %v3767_v24 }
 0x4d4   :  { %v2051_v2 = vmul.f32 -1.442695, %v1633_v6  ;;  %v2053_v45 = vmul.f32 -1.442695, %v1635_v46  ;;  %v1614_v4 = vpop.f32.mrf.mxu2 }
 0x4d5   :  { %v1622_v5 = vrot.slane %v1614_v4, 4 }
 0x4d6   :  { %2138 = vpow2.f32 %v2051_v2 }
 0x4d7   :  { %2140 = vpow2.f32 %v2053_v45  ;;  %v1624_v26 = vsel %vm1034_vm10, %v1594_v22, %v1622_v5 }
 0x4d8   :  { %v1626_v27 = vrot.slane %v1624_v26, 6  ;;  %v1628_v62 = vrot.slane %v1624_v26, 7 }
 0x4da   :  { %v1634_v8 = vadd.f32 %v1626_v27, %v3769_v30  ;;  %v1636_v28 = vadd.f32 %v1628_v62, %v3378_v12 }
 0x4dc   :  { %v2139_v1 = vpop.eup %2138  ;;  %v2052_v31 = vmul.f32 -1.442695, %v1634_v8  ;;  %v2054_v50 = vmul.f32 -1.442695, %v1636_v28  ;;  %v1715_v20 = vrot.slane %v1634_v8, 4  ;;  %v1716_v32 = vrot.slane %v1636_v28, 4 }
 0x4dd   :  { %v2141_v3 = vpop.eup %2140  ;;  %v1649_v33 = vadd.f32 1.0, %v2139_v1 }
 0x4de   :  { %v1651_v55 = vadd.f32 1.0, %v2141_v3  ;;  %2142 = vpow2.f32 %v2052_v31 }
 0x4df   :  { %2144 = vrcp.f32 %v1649_v33  ;;  %v1664_v34 = vand.u32 2147483648, %v1649_v33  ;;  %v1662_v10 = vand.u32 2147483647, %v1649_v33  ;;  %vm1658_vm2 = vweird.f32 %v1649_v33 }
 0x4e0   :  { %2146 = vrcp.f32 %v1651_v55  ;;  %v1694_v44 = vand.u32 2147483648, %v1651_v55  ;;  %v1692_v39 = vand.u32 2147483647, %v1651_v55  ;;  %vm1688_vm3 = vweird.f32 %v1651_v55 }
 0x4e1   :  { %2148 = vpow2.f32 %v2054_v50  ;;  %v1665_v59 = vor.u32 1.1754944e-38, %v1664_v34  ;;  %vm1663_vm5 = vcmp.eq.f32.partialorder %v1662_v10, 8.507059e+37  ;;  %v1987_v10 = vld [vmem:[%s3668_s1 + $0x258] sm:$0xff] }
 0x4e2   :  { %v1695_v19 = vor.u32 1.1754944e-38, %v1694_v44  ;;  %vm1693_vm7 = vcmp.eq.f32.partialorder %v1692_v39, 8.507059e+37 }
 0x4e4   :  { %v2143_v61 = vpop.eup %2142 }
 0x4e5   :  { %v2145_v25 = vpop.eup %2144  ;;  %v3559_v9 = vadd.f32 1.0, %v2143_v61 }
 0x4e6   :  { %v2147_v52 = vpop.eup %2146  ;;  %v1654_v63 = vmul.f32 %v2145_v25, %v1649_v33  ;;  %vm1659_vm15 = vweird.f32 %v2145_v25 }
 0x4e7   :  { %v2149_v18 = vpop.eup %2148  ;;  %v1684_v14 = vmul.f32 %v2147_v52, %v1651_v55  ;;  %2150 = vrcp.f32 %v3559_v9  ;;  %vm1689_vm0 = vweird.f32 %v2147_v52  ;;  %vm1660_vm4 = vmor %vm1658_vm2, %vm1659_vm15  ;;  %vm1673_vm9 = vweird.f32 %v3559_v9 }
 0x4e8   :  { %v1655_v23 = vsub.f32 1.0, %v1654_v63  ;;  %v3562_v15 = vadd.f32 1.0, %v2149_v18  ;;  %vm1690_vm6 = vmor %vm1688_vm3, %vm1689_vm0  ;;  %v1679_v29 = vand.u32 2147483648, %v3559_v9  ;;  %v1677_v62 = vand.u32 2147483647, %v3559_v9 }
 0x4e9   :  { %v1685_v35 = vsub.f32 1.0, %v1684_v14  ;;  %v1745_v14 = vpop.permute.xlu1 %1744 }
 0x4ea   :  { %v1656_v37 = vmul.f32 %v2145_v25, %v1655_v23  ;;  %2152 = vrcp.f32 %v3562_v15  ;;  %v1709_v28 = vand.u32 2147483648, %v3562_v15  ;;  %vm1703_vm13 = vweird.f32 %v3562_v15 }
 0x4eb   :  { %v1686_v38 = vmul.f32 %v2147_v52, %v1685_v35  ;;  %2154 = vtanh.f32 %v1715_v20  ;;  %v1707_v1 = vand.u32 2147483647, %v3562_v15  ;;  %v1680_v3 = vor.u32 1.1754944e-38, %v1679_v29  ;;  %v1988_v35 = vld [vmem:[%s3668_s1 + $0x260] sm:$0xff] }
 0x4ec   :  { %v1657_v7 = vadd.f32 %v2145_v25, %v1656_v37  ;;  %2156 = vtanh.f32 %v1716_v32  ;;  %vm1678_vm15 = vcmp.eq.f32.partialorder %v1677_v62, 8.507059e+37  ;;  %v1710_v50 = vor.u32 1.1754944e-38, %v1709_v28  ;;  %1991 = vmatpush.msra.mxu1 %v1988_v35  ;;  %v1986_v37 = vld [vmem:[%s3668_s1 + $0x250] sm:$0xff] }
 0x4ed   :  { %v2151_v42 = vpop.eup %2150  ;;  %v1687_v53 = vadd.f32 %v2147_v52, %v1686_v38  ;;  %vm1708_vm0 = vcmp.eq.f32.partialorder %v1707_v1, 8.507059e+37 }
 0x4ee   :  { %v1661_v16 = vsel %vm1660_vm4, %v2145_v25, %v1657_v7  ;;  %v1669_v21 = vmul.f32 %v2151_v42, %v3559_v9  ;;  %vm1674_vm8 = vweird.f32 %v2151_v42  ;;  %1992 = vmatpush.msra.mxu1 %v1987_v10 }
 0x4ef   :  { %v1666_v11 = vsel %vm1663_vm5, %v1665_v59, %v1661_v16  ;;  %v1691_v51 = vsel %vm1690_vm6, %v2147_v52, %v1687_v53  ;;  %vm1675_vm12 = vmor %vm1673_vm9, %vm1674_vm8  ;;  %v1984_v59 = vld [vmem:[%s3668_s1 + $0x240] sm:$0xff]  ;;  %v1983_v16 = vld [vmem:[%s3668_s1 + $0x238] sm:$0xff] }
 0x4f0   :  { %v2153_v48 = vpop.eup %2152  ;;  %v1696_v58 = vsel %vm1693_vm7, %v1695_v19, %v1691_v51  ;;  %v1723_v60 = vrot.slane %v1666_v11, 4  ;;  %v1670_v41 = vsub.f32 1.0, %v1669_v21  ;;  %1993 = vmatpush.msra.mxu1 %v1986_v37 }
 0x4f1   :  { %v2155_v57 = vpop.eup %2154  ;;  %v1724_v36 = vrot.slane %v1696_v58, 4  ;;  %v1699_v49 = vmul.f32 %v2153_v48, %v3562_v15  ;;  %vm1704_vm11 = vweird.f32 %v2153_v48 }
 0x4f2   :  { %v2157_v0 = vpop.eup %2156  ;;  %v1733_v6 = vmul.f32 %v1729_v56, %v1723_v60  ;;  %v1735_v46 = vmul.f32 %v2155_v57, %v1666_v11  ;;  %v1671_v2 = vmul.f32 %v2151_v42, %v1670_v41  ;;  %vm1705_vm14 = vmor %vm1703_vm13, %vm1704_vm11  ;;  %v1979_v41 = vld [vmem:[%s3668_s1 + $0x218] sm:$0xff] }
 0x4f3   :  { %v1734_v45 = vmul.f32 %v1730_v47, %v1724_v36  ;;  %v1736_v4 = vmul.f32 %v2157_v0, %v1696_v58  ;;  %v1700_v5 = vsub.f32 1.0, %v1699_v49  ;;  %v1978_v49 = vld [vmem:[%s3668_s1 + $0x210] sm:$0xff] }
 0x4f4   :  { %v3573_v22 = vadd.f32 %v1735_v46, %v1733_v6  ;;  %v1672_v43 = vadd.f32 %v2151_v42, %v1671_v2 }
 0x4f5   :  { %v3575_v26 = vadd.f32 %v1736_v4, %v1734_v45  ;;  %v1701_v27 = vmul.f32 %v2153_v48, %v1700_v5  ;;  %v1977_v4 = vld [vmem:[%s3668_s1 + $0x208] sm:$0xff] }
 0x4f6   :  { %2158 = vtanh.f32 %v3573_v22  ;;  %v1676_v31 = vsel %vm1675_vm12, %v2151_v42, %v1672_v43 }
 0x4f7   :  { %v1702_v8 = vadd.f32 %v2153_v48, %v1701_v27  ;;  %2160 = vtanh.f32 %v3575_v26  ;;  %v1681_v61 = vsel %vm1678_vm15, %v1680_v3, %v1676_v31  ;;  %v1974_v27 = vld [vmem:[%s3668_s1 + $0x1f0] sm:$0xff] }
 0x4f9   :  { %v1706_v33 = vsel %vm1705_vm14, %v2153_v48, %v1702_v8  ;;  %v1980_v48 = vld [vmem:[%s3668_s1 + $0x220] sm:$0xff]  ;;  %v1973_v8 = vld [vmem:[%s3668_s1 + $0x1e8] sm:$0xff] }
 0x4fa   :  { %v1711_v9 = vsel %vm1708_vm0, %v1710_v50, %v1706_v33 }
 0x4fc   :  { %v2159_v55 = vpop.eup %2158 }
 0x4fd   :  { %v2161_v25 = vpop.eup %2160  ;;  %v1741_v52 = vmul.f32 %v2159_v55, %v1681_v61 }
 0x4fe   :  { %v1742_v63 = vmul.f32 %v2161_v25, %v1711_v9 }
 0x4ff   :  { %v1749_v18 = vperm.slane %v1741_v52, 2 }
 0x500   :  { %v1750_v20 = vperm.slane %v1742_v63, 2 }
 0x502   :  { %v1751_v23 = vsel %vm458_vm1, %v1750_v20, %v1749_v18 }
 0x503   :  { %v1753_v32 = vmul.f32 %v1751_v23, %v1745_v14  ;;  %1771 = vmatmul.f32.vlgmr.msrb.gmra.mxu3 %v1751_v23  ;;  %1791 = vmatmul.f32.vlgmr.msrb.gmra.mxu1 %v1751_v23 }
 0x504   :  { %1811 = vmatmul.f32.vlgmr.msrb.gmra.mxu2 %v1751_v23 }
 0x505   :  { %v3587_v15 = vadd.f32 %v1753_v32, %v3508_v40  ;;  %v1985_v40 = vld [vmem:[%s3668_s1 + $0x248] sm:$0xff] }
 0x506   :  { %1994 = vmatpush.msra.mxu1 %v1985_v40 }
 0x508   :  { %1995 = vmatpush.msra.mxu1 %v1984_v59 }
 0x50a   :  { %1996 = vmatpush.msra.mxu1 %v1983_v16 }
 0x50b   :  { %1831 = vmatmul.f32.vlgmr.msra.gmra.mxu3 %v1751_v23 }
 0x50c   :  { %1997 = vmatpush.msra.mxu1 %v1982_v54 }
 0x580   :  { %v1792_v34 = vpop.f32.mrf.mxu1 }
 0x581   :  { %v1839_v44 = vrot.slane %v1792_v34, 4 }
 0x586   :  { %v1772_v38 = vpop.f32.mrf.mxu3 }
 0x587   :  { %v1841_v39 = vsel %vm1034_vm10, %v1772_v38, %v1839_v44  ;;  %v1812_v51 = vpop.f32.mrf.mxu2 }
 0x588   :  { %v1843_v7 = vrot.slane %v1841_v39, 5  ;;  %v1845_v42 = vrot.slane %v1841_v39, 6 }
 0x58a   :  { %v1851_v53 = vadd.f32 %v1843_v7, %v3768_v13  ;;  %v1853_v17 = vadd.f32 %v1845_v42, %v3767_v24  ;;  %v1981_v13 = vld [vmem:[%s3668_s1 + $0x228] sm:$0xff]  ;;  %v1947_v7 = vrot.slane %v3573_v22, 7 }
 0x58b   :  { %1998 = vmatpush.msra.mxu1 %v1981_v13 }
 0x58c   :  { %v2055_v19 = vmul.f32 -1.442695, %v1851_v53  ;;  %v2057_v21 = vmul.f32 -1.442695, %v1853_v17  ;;  %v1948_v17 = vrot.slane %v3575_v26, 7 }
 0x58d   :  { %1999 = vmatpush.msra.mxu1 %v1980_v48 }
 0x58e   :  { %2162 = vpow2.f32 %v2055_v19  ;;  %v1832_v11 = vpop.f32.mrf.mxu3 }
 0x58f   :  { %2164 = vpow2.f32 %v2057_v21  ;;  %v1840_v24 = vrot.slane %v1832_v11, 4  ;;  %2000 = vmatpush.msra.mxu1 %v1979_v41 }
 0x591   :  { %v1842_v56 = vsel %vm1034_vm10, %v1812_v51, %v1840_v24  ;;  %2001 = vmatpush.msra.mxu1 %v1978_v49 }
 0x592   :  { %v1844_v58 = vrot.slane %v1842_v56, 5  ;;  %v1846_v60 = vrot.slane %v1842_v56, 6 }
 0x593   :  { %2002 = vmatpush.msra.mxu1 %v1977_v4 }
 0x594   :  { %v2163_v57 = vpop.eup %2162  ;;  %v1852_v47 = vadd.f32 %v1844_v58, %v3769_v30  ;;  %v1854_v36 = vadd.f32 %v1846_v60, %v3378_v12  ;;  %v1976_v12 = vld [vmem:[%s3668_s1 + $0x200] sm:$0xff]  ;;  %v1975_v30 = vld [vmem:[%s3668_s1 + $0x1f8] sm:$0xff] }
 0x595   :  { %v2165_v0 = vpop.eup %2164  ;;  %v1867_v6 = vadd.f32 1.0, %v2163_v57  ;;  %2003 = vmatpush.msra.mxu1 %v1976_v12 }
 0x596   :  { %v1869_v46 = vadd.f32 1.0, %v2165_v0  ;;  %v2056_v2 = vmul.f32 -1.442695, %v1852_v47  ;;  %v2058_v45 = vmul.f32 -1.442695, %v1854_v36  ;;  %v1933_v43 = vrot.slane %v1852_v47, 4 }
 0x597   :  { %2166 = vrcp.f32 %v1867_v6  ;;  %2004 = vmatpush.msra.mxu1 %v1975_v30  ;;  %v1882_v33 = vand.u32 2147483648, %v1867_v6  ;;  %v1934_v55 = vrot.slane %v1854_v36, 4  ;;  %v1880_v63 = vand.u32 2147483647, %v1867_v6 }
 0x598   :  { %2168 = vrcp.f32 %v1869_v46  ;;  %v1912_v25 = vand.u32 2147483648, %v1869_v46  ;;  %v1910_v14 = vand.u32 2147483647, %v1869_v46  ;;  %vm1876_vm3 = vweird.f32 %v1867_v6 }
 0x599   :  { %2170 = vpow2.f32 %v2056_v2  ;;  %2005 = vmatpush.msra.mxu1 %v1974_v27  ;;  %v1883_v23 = vor.u32 1.1754944e-38, %v1882_v33  ;;  %vm1906_vm5 = vweird.f32 %v1869_v46  ;;  %vm1881_vm7 = vcmp.eq.f32.partialorder %v1880_v63, 8.507059e+37  ;;  %v1963_v27 = vpop.permute.xlu1 %1962 }
 0x59a   :  { %2172 = vpow2.f32 %v2058_v45  ;;  %v1913_v34 = vor.u32 1.1754944e-38, %v1912_v25  ;;  %vm1911_vm8 = vcmp.eq.f32.partialorder %v1910_v14, 8.507059e+37 }
 0x59b   :  { %2174 = vtanh.f32 %v1933_v43  ;;  %2006 = vmatpush.msra.mxu1 %v1973_v8 }
 0x59d   :  { %v2167_v5 = vpop.eup %2166 }
 0x59e   :  { %v2169_v29 = vpop.eup %2168  ;;  %v1872_v62 = vmul.f32 %v2167_v5, %v1867_v6  ;;  %vm1877_vm10 = vweird.f32 %v2167_v5 }
 0x59f   :  { %v2171_v28 = vpop.eup %2170  ;;  %v1902_v1 = vmul.f32 %v2169_v29, %v1869_v46  ;;  %vm1907_vm2 = vweird.f32 %v2169_v29  ;;  %vm1878_vm4 = vmor %vm1876_vm3, %vm1877_vm10 }
 0x5a0   :  { %v2173_v31 = vpop.eup %2172  ;;  %v1873_v3 = vsub.f32 1.0, %v1872_v62  ;;  %v3643_v50 = vadd.f32 1.0, %v2171_v28  ;;  %vm1908_vm6 = vmor %vm1906_vm5, %vm1907_vm2 }
 0x5a1   :  { %v1903_v61 = vsub.f32 1.0, %v1902_v1  ;;  %v3645_v9 = vadd.f32 1.0, %v2173_v31  ;;  %v2175_v10 = vpop.eup %2174  ;;  %v2089_v1 = vld [vmem:[%s3668_s1 + $0x83] ss:$0 sm:$0xff] }
 0x5a2   :  { %v1874_v52 = vmul.f32 %v2167_v5, %v1873_v3  ;;  %2176 = vrcp.f32 %v3643_v50  ;;  %vm1891_vm9 = vweird.f32 %v3643_v50  ;;  %v1897_v58 = vand.u32 2147483648, %v3643_v50 }
 0x5a3   :  { %v1904_v18 = vmul.f32 %v2169_v29, %v1903_v61  ;;  %2178 = vrcp.f32 %v3645_v9  ;;  %v1895_v41 = vand.u32 2147483647, %v3643_v50  ;;  %v1927_v57 = vand.u32 2147483648, %v3645_v9 }
 0x5a4   :  { %2180 = vtanh.f32 %v1934_v55  ;;  %v1875_v20 = vadd.f32 %v2167_v5, %v1874_v52  ;;  %vm1921_vm14 = vweird.f32 %v3645_v9  ;;  %v1925_v36 = vand.u32 2147483647, %v3645_v9 }
 0x5a5   :  { %v1905_v32 = vadd.f32 %v2169_v29, %v1904_v18  ;;  %v1898_v0 = vor.u32 1.1754944e-38, %v1897_v58  ;;  %vm1896_vm0 = vcmp.eq.f32.partialorder %v1895_v41, 8.507059e+37  ;;  %v1928_v46 = vor.u32 1.1754944e-38, %v1927_v57 }
 0x5a6   :  { %v1879_v35 = vsel %vm1878_vm4, %v2167_v5, %v1875_v20  ;;  %vm1926_vm10 = vcmp.eq.f32.partialorder %v1925_v36, 8.507059e+37 }
 0x5a7   :  { %v1884_v37 = vsel %vm1881_vm7, %v1883_v23, %v1879_v35  ;;  %v1909_v44 = vsel %vm1908_vm6, %v2169_v29, %v1905_v32 }
 0x5a8   :  { %v2177_v38 = vpop.eup %2176  ;;  %v1914_v40 = vsel %vm1911_vm8, %v1913_v34, %v1909_v44  ;;  %v1941_v39 = vrot.slane %v1884_v37, 4  ;;  %v1953_v54 = vmul.f32 %v2175_v10, %v1884_v37 }
 0x5a9   :  { %v2179_v42 = vpop.eup %2178  ;;  %v1887_v59 = vmul.f32 %v2177_v38, %v3643_v50  ;;  %v1942_v53 = vrot.slane %v1914_v40, 4  ;;  %vm1892_vm11 = vweird.f32 %v2177_v38 }
 0x5aa   :  { %v2181_v16 = vpop.eup %2180  ;;  %v1917_v19 = vmul.f32 %v2179_v42, %v3645_v9  ;;  %v1951_v21 = vmul.f32 %v1947_v7, %v1941_v39  ;;  %vm1922_vm12 = vweird.f32 %v2179_v42  ;;  %vm1893_vm13 = vmor %vm1891_vm9, %vm1892_vm11 }
 0x5ab   :  { %v1888_v11 = vsub.f32 1.0, %v1887_v59  ;;  %v1952_v13 = vmul.f32 %v1948_v17, %v1942_v53  ;;  %v1954_v24 = vmul.f32 %v2181_v16, %v1914_v40  ;;  %vm1923_vm15 = vmor %vm1921_vm14, %vm1922_vm12 }
 0x5ac   :  { %v1918_v51 = vsub.f32 1.0, %v1917_v19  ;;  %v1955_v48 = vadd.f32 %v1953_v54, %v1951_v21 }
 0x5ad   :  { %v1889_v56 = vmul.f32 %v2177_v38, %v1888_v11  ;;  %v1956_v22 = vadd.f32 %v1954_v24, %v1952_v13 }
 0x5ae   :  { %v1919_v60 = vmul.f32 %v2179_v42, %v1918_v51  ;;  %2182 = vtanh.f32 %v1955_v48 }
 0x5af   :  { %v1890_v26 = vadd.f32 %v2177_v38, %v1889_v56  ;;  %2184 = vtanh.f32 %v1956_v22 }
 0x5b0   :  { %v1920_v47 = vadd.f32 %v2179_v42, %v1919_v60 }
 0x5b1   :  { %v1894_v49 = vsel %vm1893_vm13, %v2177_v38, %v1890_v26 }
 0x5b2   :  { %v1924_v6 = vsel %vm1923_vm15, %v2179_v42, %v1920_v47  ;;  %v1899_v45 = vsel %vm1896_vm0, %v1898_v0, %v1894_v49 }
 0x5b3   :  { %v1929_v12 = vsel %vm1926_vm10, %v1928_v46, %v1924_v6 }
 0x5b4   :  { %v2183_v2 = vpop.eup %2182 }
 0x5b5   :  { %v2185_v4 = vpop.eup %2184  ;;  %v1959_v30 = vmul.f32 %v2183_v2, %v1899_v45 }
 0x5b6   :  { %v1960_v5 = vmul.f32 %v2185_v4, %v1929_v12 }
 0x5b7   :  { %v1967_v43 = vperm.slane %v1959_v30, 3 }
 0x5b8   :  { %v1968_v29 = vperm.slane %v1960_v5, 3 }
 0x5ba   :  { %v1969_v62 = vsel %vm458_vm1, %v1968_v29, %v1967_v43 }
 0x5bb   :  { %v1971_v8 = vmul.f32 %v1969_v62, %v1963_v27 }
 0x5bd   :  { %v1972_v28 = vadd.f32 %v1971_v8, %v3587_v15 }
 0x5bf   :  { %2007 = vmatmul.f32.vlgmr.msra.gmra.mxu1 %v1972_v28 }
 0x63c   :  { %v2008_v31 = vpop.f32.mrf.mxu1 }
 0x63d   :  { %v2009_v3 = vadd.f32 %v2089_v1, %v2008_v31 }
 0x63f   :  { %2011 = vst [vmem:[#allocation2] sm:$0x3] %v2009_v3 }
 0x640   :  { %2022 = dma.vmem_to_hbm [thread:$0]  %s2018_s13, 32, %s2020_s16, [#allocation3]  }
 0x641   :  { %2218 = dma.done.wait [#allocation3], 32  }
 0x642   :  { %2219 = vsyncadd [#allocation3], 4294967264 }
 0x643   :  { %2027 = vsyncpa [#allocation3], 1 }

</bundles_post_ra>
